<compile_context>
chip_gen: v6e
topology: v6e:2x2x1
jax: 0.10.0
libtpu: 0.0.40
codegen_flags: <defaults>
</compile_context>

<pallas_src>
import jax
import jax.numpy as jnp
from jax.experimental import pallas as pl
from jax.experimental.pallas import tpu as pltpu


def _round_up(x, m):
    return ((x + m - 1) // m) * m


# ----------------------------------------------------------------------------
# Pallas kernel: powerprop weight transform (hoisted) + tiled matmul + bias
# ----------------------------------------------------------------------------
def _make_powerprop_kernel(tk):
    def kernel(alpha_ref, x_ref, w_ref, b_ref, o_ref, acc_ref, weff_ref):
        # grid = (j: N tiles, i: M tiles, k: K tiles), k innermost.
        i = pl.program_id(1)
        k = pl.program_id(2)

        # ---- one-time (per N tile) powerprop transform into VMEM scratch ----
        @pl.when((i == 0) & (k == 0))
        def _():
            alpha = alpha_ref[0]
            w = w_ref[...].astype(jnp.float32)          # (Kp, tn) raw weight slab
            aw = jnp.abs(w)
            # Guard |w| == 0 so alpha < 1 (and zero-padded rows/cols) never
            # produce inf * 0 = NaN in the forward path.
            w_eff = w * jnp.where(aw > 0.0, jnp.power(aw, alpha - 1.0), 0.0)
            weff_ref[...] = w_eff.astype(weff_ref.dtype)

        # ---- f32 accumulator over the K reduction axis ----
        @pl.when(k == 0)
        def _():
            acc_ref[...] = jnp.zeros_like(acc_ref)

        koff = pl.multiple_of(k * tk, tk)
        acc_ref[...] += jnp.dot(
            x_ref[...],
            weff_ref[pl.ds(koff, tk), :],
            preferred_element_type=jnp.float32,
        )

        # ---- finalize: add bias, downcast, store (lane-dense tn-wide tile) ----
        @pl.when(k == pl.num_programs(2) - 1)
        def _():
            o_ref[...] = (acc_ref[...] + b_ref[...]).astype(o_ref.dtype)

    return kernel


def powerprop_matmul(x2d, weight_t, bias, alpha, *,
                     compute_dtype=jnp.bfloat16,
                     tm_max=512, tk_max=512, tn_max=256):
    """y[M, N] = x2d[M, K] @ (w * |w|^(alpha-1))[K, N] + bias[N].

    weight_t is the RAW weight already transposed to (K, N); the powerprop
    transform itself happens inside the kernel (once per N tile).
    """
    M, K = x2d.shape
    K2, N = weight_t.shape
    assert K == K2, (K, K2)
    out_dtype = x2d.dtype
    compute_dtype = jnp.dtype(compute_dtype)

    # ---- tile / padding selection -------------------------------------------
    tm = min(tm_max, _round_up(M, 8))        # sublane-aligned M tile, <= tm_max
    Mp = _round_up(M, tm)
    Kp = _round_up(K, 128)                   # lane-aligned K
    tk = tk_max
    while Kp % tk != 0:                      # tk in {512, 256, 128}
        tk //= 2
    Np = _round_up(N, 128)                   # lane-dense output
    tn = tn_max if Np % tn_max == 0 else 128

    num_n, num_m, num_k = Np // tn, Mp // tm, Kp // tk

    # ---- pad operands (zeros are neutralized by the w==0 guard in-kernel) ----
    xq = jnp.pad(x2d.astype(compute_dtype), ((0, Mp - M), (0, Kp - K)))
    wq = jnp.pad(weight_t.astype(jnp.float32), ((0, Kp - K), (0, Np - N)))
    bq = jnp.pad(bias.astype(jnp.float32), (0, Np - N)).reshape(1, Np)
    alpha_arr = jnp.asarray([alpha], dtype=jnp.float32)

    cost = pl.CostEstimate(
        flops=int(2 * Mp * Kp * Np),
        transcendentals=int(2 * Kp * Np),     # log + exp per weight element
        bytes_accessed=int(Mp * Kp * compute_dtype.itemsize * num_n
                           + Kp * Np * 4 * num_n
                           + Mp * Np * jnp.dtype(out_dtype).itemsize),
    )

    out = pl.pallas_call(
        _make_powerprop_kernel(tk),
        out_shape=jax.ShapeDtypeStruct((Mp, Np), out_dtype),
        grid=(num_n, num_m, num_k),
        in_specs=[
            pl.BlockSpec(memory_space=pltpu.MemorySpace.SMEM),       # alpha
            pl.BlockSpec((tm, tk), lambda j, i, k: (i, k)),          # activations
            pl.BlockSpec((Kp, tn), lambda j, i, k: (0, j)),          # raw weight slab
            pl.BlockSpec((1, tn), lambda j, i, k: (0, j)),           # bias
        ],
        out_specs=pl.BlockSpec((tm, tn), lambda j, i, k: (i, j)),
        scratch_shapes=[
            pltpu.VMEM((tm, tn), jnp.float32),      # K-reduction accumulator
            pltpu.VMEM((Kp, tn), compute_dtype),    # cached transformed weight
        ],
        compiler_params=pltpu.CompilerParams(
            # N tiles shard across TensorCores; M stays "arbitrary" because the
            # weight-transform hoist is keyed on program_id(1) == 0; K is the
            # innermost reduction.
            dimension_semantics=("parallel", "arbitrary", "arbitrary"),
            vmem_limit_bytes=32 * 1024 * 1024,
        ),
        cost_estimate=cost,
    )(alpha_arr, xq, wq, bq)

    return out[:M, :N]


# ----------------------------------------------------------------------------
# Wrappers mirroring PowerpropagationWrapper.forward
# ----------------------------------------------------------------------------
def powerprop_conv2d(x, weight, bias, alpha, *, stride=1, padding=1, dilation=1,
                     groups=1, compute_dtype=jnp.bfloat16):
    """Conv2d branch. x: NCHW, weight: (Cout, Cin, KH, KW)."""
    # TODO(synk): grouped convolution (groups > 1) not implemented in the kernel.
    assert groups == 1, "groups > 1 not supported"
    sh, sw = (stride, stride) if isinstance(stride, int) else stride
    ph, pw = (padding, padding) if isinstance(padding, int) else padding
    dh, dw = (dilation, dilation) if isinstance(dilation, int) else dilation

    N, Cin, H, W = x.shape
    Cout, _, KH, KW = weight.shape
    OH = (H + 2 * ph - dh * (KH - 1) - 1) // sh + 1
    OW = (W + 2 * pw - dw * (KW - 1) - 1) // sw + 1

    # Transpose-free im2col: go NHWC once (cheap), then build patches whose
    # K ordering is (kh, kw, cin) — matching the pre-transposed weight below —
    # so the big patch matrix never needs a layout transpose.
    xp = jnp.pad(x, ((0, 0), (0, 0), (ph, ph), (pw, pw)))
    xp = xp.transpose(0, 2, 3, 1)                                   # NHWC
    cols = []
    for kh in range(KH):
        h0 = kh * dh
        for kw in range(KW):
            w0 = kw * dw
            cols.append(xp[:, h0:h0 + sh * OH:sh, w0:w0 + sw * OW:sw, :])
    patches = jnp.stack(cols, axis=3)                               # (N,OH,OW,KH*KW,Cin)
    patches = patches.reshape(N * OH * OW, KH * KW * Cin)

    # Raw weight pre-transposed to (K, Cout) with matching (kh, kw, cin) rows.
    w_t = weight.transpose(2, 3, 1, 0).reshape(KH * KW * Cin, Cout)

    out2d = powerprop_matmul(patches, w_t, bias, alpha,
                             compute_dtype=compute_dtype)           # (N*OH*OW, Cout)
    return out2d.reshape(N, OH, OW, Cout).transpose(0, 3, 1, 2)     # back to NCHW


def powerprop_linear(x, weight, bias, alpha, *, compute_dtype=jnp.bfloat16):
    """Linear branch. x: (..., in_features), weight: (out_features, in_features)."""
    lead = x.shape[:-1]
    x2d = x.reshape(-1, x.shape[-1])
    y = powerprop_matmul(x2d, weight.T, bias, alpha, compute_dtype=compute_dtype)
    return y.reshape(*lead, weight.shape[0])


def set_alpha_init(weight, old_alpha, new_alpha):
    """Mirrors PowerpropagationWrapper.set_alpha's weight rescaling (plain JAX)."""
    w = weight * jnp.power(jnp.abs(weight), old_alpha / new_alpha - 1.0)
    return jnp.nan_to_num(w)


# ----------------------------------------------------------------------------
# Demo / self-check
# ----------------------------------------------------------------------------
if __name__ == "__main__":
    key = jax.random.PRNGKey(0)
    k1, k2, k3, k4, k5, k6 = jax.random.split(key, 6)
    alpha = 2.0

    # ---- Conv2d case: Conv2d(4, 8, kernel=3, stride=1, padding=1) ----
    N, Cin, H, W = 2, 4, 16, 16
    Cout, KH, KW = 8, 3, 3
    x_conv = jax.random.normal(k1, (N, Cin, H, W), dtype=jnp.float32)
    w_conv_raw = 0.1 * jax.random.normal(k2, (Cout, Cin, KH, KW), dtype=jnp.float32)
    b_conv = 0.1 * jax.random.normal(k3, (Cout,), dtype=jnp.float32)
    w_conv = set_alpha_init(w_conv_raw, 1.0, alpha)   # set_alpha(2.0) on fresh weights

    # f32 compute path: strict numerical check of the forward semantics.
    y_conv = powerprop_conv2d(x_conv, w_conv, b_conv, alpha,
                              stride=1, padding=1, compute_dtype=jnp.float32)
    y_conv = jax.block_until_ready(y_conv)

    w_eff = w_conv * jnp.power(jnp.abs(w_conv), alpha - 1.0)
    y_ref = jax.lax.conv_general_dilated(
        x_conv, w_eff, window_strides=(1, 1), padding=((1, 1), (1, 1)),
        dimension_numbers=("NCHW", "OIHW", "NCHW"))
    y_ref = y_ref + b_conv.reshape(1, Cout, 1, 1)
    assert y_conv.shape == (N, Cout, H, W)
    assert jnp.allclose(y_conv, y_ref, rtol=1e-3, atol=1e-4)

    # ---- Linear case: Linear(32, 16) ----
    B, D_in, D_out = 8, 32, 16
    x_lin = jax.random.normal(k4, (B, D_in), dtype=jnp.float32)
    w_lin_raw = 0.1 * jax.random.normal(k5, (D_out, D_in), dtype=jnp.float32)
    b_lin = 0.1 * jax.random.normal(k6, (D_out,), dtype=jnp.float32)
    w_lin = set_alpha_init(w_lin_raw, 1.0, alpha)

    w_lin_eff = w_lin * jnp.power(jnp.abs(w_lin), alpha - 1.0)
    y_lin_ref = x_lin @ w_lin_eff.T + b_lin

    # f32 compute path: strict check.
    y_lin_f32 = powerprop_linear(x_lin, w_lin, b_lin, alpha,
                                 compute_dtype=jnp.float32)
    y_lin_f32 = jax.block_until_ready(y_lin_f32)
    assert y_lin_f32.shape == (B, D_out)
    assert jnp.allclose(y_lin_f32, y_lin_ref, rtol=1e-3, atol=1e-4)

    # Default bf16 MXU path: looser tolerance (bf16 operands, f32 accumulation).
    y_lin_bf16 = powerprop_linear(x_lin, w_lin, b_lin, alpha)
    y_lin_bf16 = jax.block_until_ready(y_lin_bf16)
    assert y_lin_bf16.shape == (B, D_out)
    assert jnp.allclose(y_lin_bf16, y_lin_ref, rtol=2e-2, atol=2e-2)

    print("KERNEL_OK")
</pallas_src>

<mosaic_0001>
module attributes {stable_mosaic.version = 11 : i64} {
  func.func @kernel(%arg0: i32, %arg1: i32, %arg2: i32, %arg3: memref<1xf32, #tpu.memory_space<smem>>, %arg4: memref<512x128xf32, #tpu.memory_space<vmem>>, %arg5: memref<128x128xf32, #tpu.memory_space<vmem>>, %arg6: memref<1x128xf32, #tpu.memory_space<vmem>>, %arg7: memref<512x128xf32, #tpu.memory_space<vmem>>, %arg8: memref<512x128xf32, #tpu.memory_space<vmem>>, %arg9: memref<128x128xf32, #tpu.memory_space<vmem>>) attributes {dimension_semantics = [#tpu.dimension_semantics<parallel>, #tpu.dimension_semantics<arbitrary>, #tpu.dimension_semantics<arbitrary>], iteration_bounds = array<i64: 1, 1, 1>, scalar_prefetch = 0 : i64, scratch_operands = 2 : i64, tpu.core_type = #tpu.core_type<tc>, window_params = [{transform_indices = @transform_0, window_bounds = array<i64: 1>}, {transform_indices = @transform_1, window_bounds = array<i64: 512, 128>}, {transform_indices = @transform_2, window_bounds = array<i64: 128, 128>}, {transform_indices = @transform_3, window_bounds = array<i64: 1, 128>}, {transform_indices = @transform_4, window_bounds = array<i64: 512, 128>}]} {
    %c0_i32 = arith.constant 0 : i32
    %0 = arith.cmpi eq, %arg1, %c0_i32 : i32
    %c0_i32_0 = arith.constant 0 : i32
    %1 = arith.cmpi eq, %arg2, %c0_i32_0 : i32
    %2 = arith.andi %0, %1 : i1
    %3 = arith.extui %2 : i1 to i32
    %c0_i32_1 = arith.constant 0 : i32
    %4 = arith.cmpi ne, %3, %c0_i32_1 : i32
    scf.if %4 {
      %c0_12 = arith.constant 0 : index
      %20 = memref.load %arg3[%c0_12] : memref<1xf32, #tpu.memory_space<smem>>
      %c0_13 = arith.constant 0 : index
      %c0_14 = arith.constant 0 : index
      %21 = vector.load %arg5[%c0_13, %c0_14] : memref<128x128xf32, #tpu.memory_space<vmem>>, vector<128x128xf32>
      %22 = math.absf %21 : vector<128x128xf32>
      %cst_15 = arith.constant 0.000000e+00 : f32
      %23 = vector.broadcast %cst_15 : f32 to vector<128x128xf32>
      %24 = arith.cmpf ogt, %22, %23 : vector<128x128xf32>
      %cst_16 = arith.constant 1.000000e+00 : f32
      %25 = arith.subf %20, %cst_16 : f32
      %26 = vector.broadcast %25 : f32 to vector<128x128xf32>
      %27 = math.powf %22, %26 : vector<128x128xf32>
      %cst_17 = arith.constant 0.000000e+00 : f32
      %28 = vector.broadcast %cst_17 : f32 to vector<128x128xf32>
      %29 = arith.select %24, %27, %28 : vector<128x128xi1>, vector<128x128xf32>
      %30 = arith.mulf %21, %29 : vector<128x128xf32>
      %c0_18 = arith.constant 0 : index
      %c0_19 = arith.constant 0 : index
      %31 = vector.load %arg9[%c0_18, %c0_19] : memref<128x128xf32, #tpu.memory_space<vmem>>, vector<128x128xf32>
      tpu.vector_store %arg9[%c0_18, %c0_19], %30 {strides = array<i32>} : memref<128x128xf32, #tpu.memory_space<vmem>>, vector<128x128xf32>,
    } else {
    }
    %c0_i32_2 = arith.constant 0 : i32
    %5 = arith.cmpi eq, %arg2, %c0_i32_2 : i32
    %6 = arith.extui %5 : i1 to i32
    %c0_i32_3 = arith.constant 0 : i32
    %7 = arith.cmpi ne, %6, %c0_i32_3 : i32
    scf.if %7 {
      %cst_12 = arith.constant 0.000000e+00 : f32
      %20 = vector.broadcast %cst_12 : f32 to vector<512x128xf32>
      %c0_13 = arith.constant 0 : index
      %c0_14 = arith.constant 0 : index
      %21 = vector.load %arg8[%c0_13, %c0_14] : memref<512x128xf32, #tpu.memory_space<vmem>>, vector<512x128xf32>
      tpu.vector_store %arg8[%c0_13, %c0_14], %20 {strides = array<i32>} : memref<512x128xf32, #tpu.memory_space<vmem>>, vector<512x128xf32>,
    } else {
    }
    %c128_i32 = arith.constant 128 : i32
    %8 = arith.muli %arg2, %c128_i32 : i32
    %9 = tpu.assume_multiple %8, 128 : i32
    %c0 = arith.constant 0 : index
    %c0_4 = arith.constant 0 : index
    %10 = vector.load %arg8[%c0, %c0_4] : memref<512x128xf32, #tpu.memory_space<vmem>>, vector<512x128xf32>
    %c0_5 = arith.constant 0 : index
    %c0_6 = arith.constant 0 : index
    %11 = vector.load %arg4[%c0_5, %c0_6] : memref<512x128xf32, #tpu.memory_space<vmem>>, vector<512x128xf32>
    %12 = arith.index_cast %9 : i32 to index
    %c0_7 = arith.constant 0 : index
    %13 = vector.load %arg9[%12, %c0_7] : memref<128x128xf32, #tpu.memory_space<vmem>>, vector<128x128xf32>
    %cst = arith.constant dense<0.000000e+00> : vector<512x128xf32>
    %14 = tpu.matmul %11, %13, %cst {dimension_numbers = #tpu.dot_dimension_numbers<[1], [0], [0], [1], [0, 0, 1, 1], [], []>} : vector<512x128xf32>, vector<128x128xf32>, vector<512x128xf32> -> vector<512x128xf32>
    %15 = arith.addf %10, %14 : vector<512x128xf32>
    %c0_8 = arith.constant 0 : index
    %c0_9 = arith.constant 0 : index
    %16 = vector.load %arg8[%c0_8, %c0_9] : memref<512x128xf32, #tpu.memory_space<vmem>>, vector<512x128xf32>
    tpu.vector_store %arg8[%c0_8, %c0_9], %15 {strides = array<i32>} : memref<512x128xf32, #tpu.memory_space<vmem>>, vector<512x128xf32>,
    %c0_i32_10 = arith.constant 0 : i32
    %17 = arith.cmpi eq, %arg2, %c0_i32_10 : i32
    %18 = arith.extui %17 : i1 to i32
    %c0_i32_11 = arith.constant 0 : i32
    %19 = arith.cmpi ne, %18, %c0_i32_11 : i32
    scf.if %19 {
      %c0_12 = arith.constant 0 : index
      %c0_13 = arith.constant 0 : index
      %20 = vector.load %arg8[%c0_12, %c0_13] : memref<512x128xf32, #tpu.memory_space<vmem>>, vector<512x128xf32>
      %c0_14 = arith.constant 0 : index
      %c0_15 = arith.constant 0 : index
      %21 = vector.load %arg6[%c0_14, %c0_15] : memref<1x128xf32, #tpu.memory_space<vmem>>, vector<1x128xf32>
      %22 = vector.broadcast %21 : vector<1x128xf32> to vector<512x128xf32>
      %23 = arith.addf %20, %22 : vector<512x128xf32>
      %c0_16 = arith.constant 0 : index
      %c0_17 = arith.constant 0 : index
      %24 = vector.load %arg7[%c0_16, %c0_17] : memref<512x128xf32, #tpu.memory_space<vmem>>, vector<512x128xf32>
      tpu.vector_store %arg7[%c0_16, %c0_17], %23 {strides = array<i32>} : memref<512x128xf32, #tpu.memory_space<vmem>>, vector<512x128xf32>,
    } else {
    }
    return
  }
  func.func @transform_0(%arg0: i32, %arg1: i32, %arg2: i32) -> i32 {
    %c0_i32 = arith.constant 0 : i32
    %c0_i32_0 = arith.constant 0 : i32
    return %c0_i32 : i32
  }
  func.func @transform_1(%arg0: i32, %arg1: i32, %arg2: i32) -> (i32, i32) {
    %c0_i32 = arith.constant 0 : i32
    return %arg1, %arg2 : i32, i32
  }
  func.func @transform_2(%arg0: i32, %arg1: i32, %arg2: i32) -> (i32, i32) {
    %c0_i32 = arith.constant 0 : i32
    %c0_i32_0 = arith.constant 0 : i32
    return %c0_i32, %arg0 : i32, i32
  }
  func.func @transform_3(%arg0: i32, %arg1: i32, %arg2: i32) -> (i32, i32) {
    %c0_i32 = arith.constant 0 : i32
    %c0_i32_0 = arith.constant 0 : i32
    return %c0_i32, %arg0 : i32, i32
  }
  func.func @transform_4(%arg0: i32, %arg1: i32, %arg2: i32) -> (i32, i32) {
    %c0_i32 = arith.constant 0 : i32
    return %arg1, %arg0 : i32, i32
  }
}

</mosaic_0001>

<bundles_post_ra>
// kernel: tpu_custom_call.1
= control target key start
LH: loop header
LB: loop body
LE: loop exit
PB: predicated region body
PF: predicated region fallthrough
CT: control target
= control target key end

     0   :  { %10 = vsyncpa [#allocation6], 0  ;;  %s3840_s0 = inlined_call_operand.<no memory space> [shape: f32[1], index: 0, kind: input, shape index: {}]   ;;  %s3841_s1 = inlined_call_operand.hbm [shape: f32[512,128], index: 1, kind: input, shape index: {}]   ;;  %s3842_s2 = inlined_call_operand.hbm [shape: f32[128,128], index: 2, kind: input, shape index: {}]   ;;  %s3843_s3 = inlined_call_operand.vmem [shape: f32[1,128], index: 3, kind: input, shape index: {}]   ;;  %s3844_s4 = inlined_call_operand.hbm [shape: f32[512,128], index: 4, kind: output, shape index: {}]  }
   0x1   :  { %11 = vsyncpa [#allocation9], 0 }
   0x2   :  { %12 = vsyncpa [#allocation7], 0  ;;  %s2277_s15 = smov [#allocation5]  }
   0x3   :  { %s20_s16 = sshll.u32 %s2277_s15, 4  ;;  %s21_s16 = int_to_ptr.vmem [resolvable:$true] %s20_s16 }
   0x4   :  { %s2219_s17 = scalar_lea.vmem %s21_s16, 8192  ;;  %p2224_p1 = scmp.lt.s32.totalorder %s21_s16, %s21_s16 }
   0x5   :  { %p2220_p0 = scmp.ne.s32.totalorder %s21_s16, %s2219_s17  ;;  %p2225_p2 = scmp.lt.s32.totalorder %s2219_s17, %s2219_s17 }
   0x7   :  { %p2226_p3 = por %p2225_p2, %p2224_p1 }
   0x9   :  { %p2227_p4 = pnand %p2226_p3, %p2220_p0 }
   0xb   :  { %2230 = shalt.err (!%p2227_p4)
}
   0xc   :  { %s2278_s18 = smov 128   ;;  %s2279_s19 = smov 8  }
   0xd   :  { %26 = dma.hbm_to_vmem [thread:$0]  %s3841_s1, 8192, %s21_s16, [#allocation6], %s2278_s18, %s2278_s18, %s2279_s19  }
   0xe   :  { %s2280_s22 = smov [#allocation8]  }
   0xf   :  { %s32_s23 = sshll.u32 %s2280_s22, 4  ;;  %s33_s23 = int_to_ptr.vmem [resolvable:$true] %s32_s23 }
  0x10   :  { %s2239_s24 = scalar_lea.vmem %s33_s23, 2048  ;;  %p2244_p6 = scmp.lt.s32.totalorder %s33_s23, %s33_s23 }
  0x11   :  { %p2240_p5 = scmp.ne.s32.totalorder %s33_s23, %s2239_s24  ;;  %p2245_p7 = scmp.lt.s32.totalorder %s2239_s24, %s2239_s24 }
  0x13   :  { %p2246_p8 = por %p2245_p7, %p2244_p6 }
  0x15   :  { %p2247_p9 = pnand %p2246_p8, %p2240_p5 }
  0x17   :  { %2250 = shalt.err (!%p2247_p9)
}
  0x18   :  { %38 = dma.hbm_to_vmem [thread:$0]  %s3842_s2, 2048, %s33_s23, [#allocation9], %s2278_s18, %s2278_s18, %s2279_s19  }
  0x19   :  { %2271 = dma.done.wait [#allocation6], 8192  }
  0x1a   :  { %2272 = vsyncadd [#allocation6], 4294959104 }
  0x1b   :  { %2273 = dma.done.wait [#allocation9], 2048  }
  0x1c   :  { %2274 = vsyncadd [#allocation9], 4294965248  ;;  %s1114_s28 = sadd.f32 -1.0, %s3840_s0  ;;  %v2330_v3 = vld [vmem:[#allocation8 + $0x78] sm:$0xff]  ;;  %v2332_v4 = vld [vmem:[#allocation8 + $0x70] sm:$0xff]  ;;  %v3866_v14 = vmov 0 }
  0x1d   :  { %v2335_v5 = vand.u32 2147483647, %v2330_v3  ;;  %v2339_v7 = vand.u32 2147483647, %v2332_v4  ;;  %v2341_v8 = vld [vmem:[#allocation8 + $0x68] sm:$0xff]  ;;  %v2347_v11 = vld [vmem:[#allocation8 + $0x60] sm:$0xff] }
  0x1e   :  { %v2324_v0 = vstv %s1114_s28  ;;  %v2345_v10 = vand.u32 2147483647, %v2341_v8  ;;  %v2353_v13 = vand.u32 2147483647, %v2347_v11  ;;  %v300_v15 = vld [vmem:[#allocation5] sm:$0xff]  ;;  %v2366_v17 = vld [vmem:[#allocation8 + $0x58] sm:$0xff] }
  0x1f   :  { %v2327_v1 = vand.u32 2147483647, %v2324_v0  ;;  %v1365_v6 = vtrunc.f32 %v2324_v0  ;;  %2147 = vlog2.f32 %v2335_v5  ;;  %v332_v16 = vld [vmem:[#allocation5 + $0x100] sm:$0xff]  ;;  %1228 = vmatprep.mubr.f32.mxu0 %v300_v15  ;;  %vm3849_vm3 = vcmp.lt.f32.partialorder %v2324_v0, 0  ;;  %v2374_v20 = vld [vmem:[#allocation8 + $0x50] sm:$0xff]  ;;  %v2399_v27 = vld [vmem:[#allocation8 + $0x48] sm:$0xff] }
  0x20   :  { %2149 = vlog2.f32 %v2339_v7  ;;  %1276 = vmatprep.mubr.f32.mxu1 %v332_v16  ;;  %vm3846_vm6 = vcmp.eq.f32.partialorder %v2335_v5, 0  ;;  %v2281_v18 = vmov 2139095040   ;;  %vm2114_vm7 = vcmp.gt.f32.partialorder %v2335_v5, 1065353216  ;;  %v2431_v36 = vld [vmem:[#allocation8 + $0x40] sm:$0xff]  ;;  %v2480_v45 = vld [vmem:[#allocation8 + $0x38] sm:$0xff]  ;;  %v2535_v55 = vld [vmem:[#allocation8 + $0x30] sm:$0xff] }
  0x21   :  { %v1369_v2 = vtrunc.f32 %v2327_v1  ;;  %vm3845_vm0 = vcmp.eq.f32.partialorder %v2327_v1, 2139095040  ;;  %vm1366_vm1 = vcmp.ne.f32.partialorder %v2324_v0, %v1365_v6  ;;  %2151 = vlog2.f32 %v2345_v10  ;;  %vm2384_vm10 = vmand %vm3849_vm3, %vm3846_vm6 }
  0x22   :  { %vm2357_vm2 = vmor %vm1366_vm1, %vm3845_vm0  ;;  %2153 = vlog2.f32 %v2353_v13  ;;  %v2371_v19 = vsel %vm3849_vm3, 0, %v2281_v18  ;;  %vm1368_vm8 = vcmp.lt.f32.partialorder %v2327_v1, 1266679808  ;;  %v2378_v21 = vand.u32 2147483647, %v2366_v17 }
  0x23   :  { %v1370_v9 = vcvt.f32.s32 %v1369_v2  ;;  %v3867_v14 = vsel %vm2357_vm2, 4294967295, %v3866_v14  ;;  %vm1373_vm5 = vmneg %vm2357_vm2  ;;  %v1394_v24 = vxor.u32 2147483648, %v2371_v19  ;;  %v2397_v26 = vand.u32 2147483647, %v2374_v20 }
  0x24   :  { %vm2391_vm11 = vmxor %vm3849_vm3, %vm2114_vm7  ;;  %2155 = vlog2.f32 %v2378_v21  ;;  %v2282_v29 = vmov 0   ;;  %vm3847_vm14 = vcmp.eq.f32.partialorder %v2339_v7, 0  ;;  %vm2415_vm15 = vcmp.ne.f32.partialorder %v2324_v0, %v2324_v0 }
  0x25   :  { %v1371_v12 = vand.u32 1, %v1370_v9  ;;  %v2409_v30 = vsel %vm3849_vm3, 2139095040, %v2282_v29  ;;  %v3874_v33 = vmov 0  ;;  %vm2111_vm1 = vcmp.lt.f32.partialorder %v2335_v5, 0  ;;  %vm2123_vm7 = vmor %vm2384_vm10, %vm2391_vm11 }
  0x26   :  { %v3875_v33 = vsel %vm2415_vm15, 4294967295, %v3874_v33  ;;  %v2429_v35 = vand.u32 2147483647, %v2399_v27  ;;  %vm2443_vm0 = vmand %vm3849_vm3, %vm3847_vm14  ;;  %vm2016_vm6 = vcmp.gt.f32.partialorder %v2345_v10, 1065353216  ;;  %v2124_v41 = vsel %vm2123_vm7, 2139095040, %v2282_v29 }
  0x27   :  { %vm1372_vm4 = vcmp.eq.s32.totalorder %v1371_v12, 1  ;;  %v2478_v44 = vand.u32 2147483647, %v2431_v36  ;;  %vm2500_vm11 = vmxor %vm3849_vm3, %vm2016_vm6  ;;  %vm3850_vm7 = vcmp.lt.f32.partialorder %v2345_v10, 0  ;;  %v2533_v54 = vand.u32 2147483647, %v2480_v45 }
  0x28   :  { %vm1374_vm9 = vmand %vm1372_vm4, %vm1373_vm5  ;;  %vm2065_vm5 = vcmp.gt.f32.partialorder %v2339_v7, 1065353216  ;;  %v3887_v56 = vmov 0  ;;  %vm3889_vm10 = vcmp.eq.f32.partialorder %v2324_v0, 0  ;;  %v3891_v57 = vmov 0 }
  0x29   :  { %vm2402_vm13 = vmand %vm1368_vm8, %vm1374_vm9  ;;  %vm3848_vm8 = vcmp.eq.f32.partialorder %v2345_v10, 0  ;;  %vm2125_vm9 = vcmp.eq.f32.partialorder %v2335_v5, 3212836864  ;;  %v3898_v60 = vmov 0  ;;  %v3901_v61 = vmov 0 }
  0x2a   :  { %v2436_v37 = vsel %vm2402_vm13, %v1394_v24, %v2371_v19  ;;  %vm3851_vm13 = vcmp.lt.f32.partialorder %v2339_v7, 0  ;;  %vm2457_vm14 = vmxor %vm3849_vm3, %vm2065_vm5  ;;  %v2523_v51 = vsel %vm2125_vm9, 1065353216, %v2124_v41  ;;  %v2608_v63 = vand.u32 2147483647, %v2535_v55 }
  0x2b   :  { %vm2473_vm12 = vmand %vm3849_vm3, %vm3848_vm8  ;;  %v2486_v46 = vsel %vm2111_vm1, %v2436_v37, %v2371_v19  ;;  %v2492_v47 = vsel %vm3851_vm13, %v2436_v37, %v2371_v19  ;;  %v2529_v52 = vsel %vm3850_vm7, %v2436_v37, %v2371_v19  ;;  %vm3893_vm8 = vcmp.lt.f32.partialorder %v2339_v7, 0 }
  0x2c   :  { %v2148_v23 = vpop.eup %2147  ;;  %vm2517_vm3 = vmand %vm2111_vm1, %vm2357_vm2  ;;  %vm3886_vm1 = vcmp.ne.f32.partialorder %v2335_v5, %v2335_v5  ;;  %v3905_v6 = vmov 0  ;;  %vm3909_vm13 = vcmp.lt.f32.partialorder %v2324_v0, 0  ;;  %v3914_v16 = vmov 0 }
  0x2d   :  { %v2093_v31 = vmul.f32 %v2148_v23, %v2324_v0  ;;  %v2150_v32 = vpop.eup %2149  ;;  %vm2542_vm9 = vmor %vm3886_vm1, %vm2415_vm15  ;;  %vm3890_vm1 = vcmp.eq.f32.partialorder %v2335_v5, 1065353216  ;;  %v3921_v24 = vmov 0 }
  0x2e   :  { %v2044_v34 = vmul.f32 %v2150_v32, %v2324_v0  ;;  %v2152_v39 = vpop.eup %2151  ;;  %v3888_v56 = vsel %vm2542_vm9, 4294967295, %v3887_v56  ;;  %vm2559_vm5 = vmor %vm3890_vm1, %vm3889_vm10  ;;  %vm3904_vm1 = vcmp.eq.f32.partialorder %v2339_v7, 1065353216 }
  0x2f   :  { %2157 = vpow2.f32 %v2093_v31  ;;  %v1995_v42 = vmul.f32 %v2152_v39, %v2324_v0  ;;  %v2154_v49 = vpop.eup %2153  ;;  %v3892_v57 = vsel %vm2559_vm5, 4294967295, %v3891_v57  ;;  %vm2568_vm6 = vmand %vm3893_vm8, %vm2357_vm2  ;;  %vm3897_vm8 = vcmp.ne.f32.partialorder %v2339_v7, %v2339_v7 }
  0x30   :  { %2159 = vlog2.f32 %v2397_v26  ;;  %v1946_v53 = vmul.f32 %v2154_v49, %v2324_v0  ;;  %vm3896_vm7 = vmor %vm2443_vm0, %vm2457_vm14  ;;  %vm3900_vm0 = vcmp.lt.f32.partialorder %v2345_v10, 0 }
  0x31   :  { %2161 = vpow2.f32 %v2044_v34  ;;  %v2075_v59 = vsel %vm3896_vm7, 2139095040, %v2282_v29  ;;  %vm2586_vm4 = vmor %vm3897_vm8, %vm2415_vm15  ;;  %vm3903_vm7 = vcmp.lt.f32.partialorder %v2353_v13, 0  ;;  %v2156_v2 = vpop.eup %2155  ;;  %vm3908_vm8 = vcmp.eq.f32.partialorder %v2353_v13, 0 }
  0x32   :  { %2163 = vlog2.f32 %v2429_v35  ;;  %v3899_v60 = vsel %vm2586_vm4, 4294967295, %v3898_v60  ;;  %vm2594_vm14 = vmand %vm3900_vm0, %vm2357_vm2  ;;  %v2602_v62 = vsel %vm3903_vm7, %v2436_v37, %v2371_v19  ;;  %v1897_v22 = vmul.f32 %v2156_v2, %v2324_v0 }
  0x33   :  { %2165 = vpow2.f32 %v1995_v42  ;;  %v3902_v61 = vsel %vm2594_vm14, 4294967295, %v3901_v61  ;;  %vm2615_vm4 = vmor %vm3904_vm1, %vm3889_vm10  ;;  %vm3852_vm1 = vcmp.lt.f32.partialorder %v2378_v21, 0  ;;  %vm3912_vm14 = vcmp.eq.f32.partialorder %v2339_v7, 3212836864 }
  0x34   :  { %2167 = vlog2.f32 %v2478_v44  ;;  %v3906_v6 = vsel %vm2615_vm4, 4294967295, %v3905_v6  ;;  %vm3907_vm7 = vmor %vm2473_vm12, %vm2500_vm11  ;;  %v2077_v15 = vsel %vm3912_vm14, 1065353216, %v2075_v59  ;;  %v2662_v23 = vsel %vm3852_vm1, %v2436_v37, %v2371_v19 }
  0x35   :  { %2169 = vpow2.f32 %v1946_v53  ;;  %v2026_v9 = vsel %vm3907_vm7, 2139095040, %v2282_v29  ;;  %vm2629_vm0 = vmand %vm3909_vm13, %vm3908_vm8  ;;  %vm3913_vm13 = vcmp.lt.f32.partialorder %v2353_v13, 0  ;;  %vm3916_vm8 = vcmp.gt.f32.partialorder %v2353_v13, 1065353216 }
  0x36   :  { %2171 = vlog2.f32 %v2533_v54  ;;  %vm2644_vm11 = vmand %vm3913_vm13, %vm2357_vm2  ;;  %vm3917_vm7 = vcmp.lt.f32.partialorder %v2324_v0, 0  ;;  %vm3923_vm12 = vcmp.eq.f32.partialorder %v2378_v21, 0  ;;  %vm3924_vm14 = vcmp.lt.f32.partialorder %v2324_v0, 0 }
  0x37   :  { %v3915_v16 = vsel %vm2644_vm11, 4294967295, %v3914_v16  ;;  %vm2652_vm10 = vmxor %vm3917_vm7, %vm3916_vm8  ;;  %vm3920_vm8 = vcmp.ne.f32.partialorder %v2345_v10, %v2345_v10  ;;  %vm3853_vm11 = vcmp.lt.f32.partialorder %v2397_v26, 0  ;;  %2173 = vpow2.f32 %v1897_v22 }
  0x38   :  { %vm2670_vm7 = vmor %vm3920_vm8, %vm2415_vm15  ;;  %vm3932_vm1 = vcmp.gt.f32.partialorder %v2378_v21, 1065353216  ;;  %vm3933_vm13 = vcmp.lt.f32.partialorder %v2324_v0, 0  ;;  %v2710_v38 = vsel %vm3853_vm11, %v2436_v37, %v2371_v19  ;;  %2175 = vlog2.f32 %v2608_v63 }
  0x39   :  { %v3922_v24 = vsel %vm2670_vm7, 4294967295, %v3921_v24  ;;  %vm2678_vm4 = vmand %vm3924_vm14, %vm3923_vm12  ;;  %vm3927_vm7 = vcmp.eq.f32.partialorder %v2345_v10, 3212836864  ;;  %vm3928_vm12 = vcmp.eq.f32.partialorder %v2324_v0, 0  ;;  %vm3929_vm14 = vcmp.eq.f32.partialorder %v2345_v10, 1065353216 }
  0x3a   :  { %v2028_v31 = vsel %vm3927_vm7, 1065353216, %v2026_v9  ;;  %vm2694_vm9 = vmor %vm3929_vm14, %vm3928_vm12  ;;  %vm3854_vm14 = vcmp.lt.f32.partialorder %v2429_v35, 0  ;;  %vm3936_vm7 = vcmp.eq.f32.partialorder %v2335_v5, 0  ;;  %vm3937_vm12 = vcmp.ne.f32.partialorder %v2353_v13, %v2353_v13 }
  0x3b   :  { %vm2702_vm8 = vmxor %vm3933_vm13, %vm3932_vm1  ;;  %v2744_v49 = vsel %vm3854_vm14, %v2436_v37, %v2371_v19 }
  0x3c   :  { %v2158_v28 = vpop.eup %2157  ;;  %vm1976_vm1 = vmor %vm2629_vm0, %vm2652_vm10  ;;  %vm3952_vm10 = vcmp.eq.f32.partialorder %v2397_v26, 0  ;;  %vm3958_vm0 = vcmp.eq.f32.partialorder %v2339_v7, 2139095040 }
  0x3d   :  { %v2160_v39 = vpop.eup %2159  ;;  %v2117_v40 = vsel %vm2517_vm3, 2143289344, %v2158_v28  ;;  %vm2734_vm5 = vmor %vm3937_vm12, %vm2415_vm15  ;;  %vm3941_vm12 = vcmp.eq.f32.partialorder %v2324_v0, 0  ;;  %vm3942_vm3 = vcmp.eq.f32.partialorder %v2353_v13, 1065353216  ;;  %v1977_v9 = vsel %vm1976_vm1, 2139095040, %v2282_v29 }
  0x3e   :  { %v2162_v41 = vpop.eup %2161  ;;  %v2119_v42 = vsel %vm3936_vm7, %v2409_v30, %v2117_v40  ;;  %v1848_v48 = vmul.f32 %v2160_v39, %v2324_v0  ;;  %vm3940_vm7 = vcmp.eq.f32.partialorder %v2327_v1, 2139095040  ;;  %vm2755_vm11 = vmor %vm3942_vm3, %vm3941_vm12  ;;  %vm3946_vm3 = vcmp.eq.f32.partialorder %v2339_v7, 0 }
  0x3f   :  { %v2127_v50 = vsel %vm3940_vm7, %v2523_v51, %v2119_v42  ;;  %v2068_v53 = vsel %vm2568_vm6, 2143289344, %v2162_v41  ;;  %v2164_v51 = vpop.eup %2163  ;;  %vm3945_vm6 = vcmp.eq.f32.partialorder %v2335_v5, 2139095040  ;;  %vm3947_vm12 = vcmp.lt.f32.partialorder %v2378_v21, 0  ;;  %vm3951_vm13 = vmmov %vm3940_vm7 }
  0x40   :  { %v2132_v58 = vsel %vm3945_vm6, %v2486_v46, %v2127_v50  ;;  %v2070_v2 = vsel %vm3946_vm3, %v2409_v30, %v2068_v53  ;;  %vm2782_vm14 = vmand %vm3947_vm12, %vm2357_vm2  ;;  %2177 = vpow2.f32 %v1848_v48  ;;  %v2166_v46 = vpop.eup %2165  ;;  %vm3950_vm3 = vnez %v3888_v56 }
  0x41   :  { %v2136_v28 = vsel %vm3950_vm3, 2143289344, %v2132_v58  ;;  %v2078_v12 = vsel %vm3951_vm13, %v2077_v15, %v2070_v2  ;;  %vm3953_vm1 = vcmp.lt.f32.partialorder %v2324_v0, 0  ;;  %v1799_v39 = vmul.f32 %v2164_v51, %v2324_v0  ;;  %vm3960_vm7 = vmor %vm2678_vm4, %vm2702_vm8 }
  0x42   :  { %vm2796_vm12 = vmand %vm3953_vm1, %vm3952_vm10  ;;  %vm3956_vm3 = vcmp.lt.f32.partialorder %v2478_v44, 0  ;;  %vm3957_vm13 = vnez %v3892_v57  ;;  %v2083_v40 = vsel %vm3958_vm0, %v2492_v47, %v2078_v12  ;;  %vm3959_vm10 = vnez %v3902_v61  ;;  %v2168_v47 = vpop.eup %2167 }
  0x43   :  { %v2806_v56 = vsel %vm3956_vm3, %v2436_v37, %v2371_v19  ;;  %v2138_v15 = vsel %vm3957_vm13, 1065353216, %v2136_v28  ;;  %v2019_v41 = vsel %vm3959_vm10, 2143289344, %v2166_v46  ;;  %v1928_v42 = vsel %vm3960_vm7, 2139095040, %v2282_v29  ;;  %vm3962_vm13 = vmmov %vm3953_vm1  ;;  %v2170_v50 = vpop.eup %2169 }
  0x44   :  { %vm3961_vm3 = vcmp.gt.f32.partialorder %v2397_v26, 1065353216  ;;  %vm3965_vm10 = vcmp.eq.f32.partialorder %v2324_v0, 1065353216  ;;  %vm3966_vm1 = vnez %v3899_v60  ;;  %vm3967_vm4 = vcmp.eq.f32.partialorder %v2345_v10, 0  ;;  %v2172_v28 = vpop.eup %2171 }
  0x45   :  { %vm2826_vm6 = vmxor %vm3962_vm13, %vm3961_vm3  ;;  %v2139_v61 = vsel %vm3965_vm10, %v2335_v5, %v2138_v15  ;;  %v2087_v25 = vsel %vm3966_vm1, 2143289344, %v2083_v40  ;;  %v2021_v34 = vsel %vm3967_vm4, %v2409_v30, %v2019_v41  ;;  %vm3968_vm8 = vcmp.ne.f32.partialorder %v2378_v21, %v2378_v21  ;;  %v2174_v57 = vpop.eup %2173 }
  0x46   :  { %vm2844_vm7 = vmor %vm3968_vm8, %vm2415_vm15  ;;  %v3969_v48 = vmov 0  ;;  %2179 = vpow2.f32 %v1799_v39  ;;  %vm3971_vm13 = vcmp.gt.f32.partialorder %v2335_v5, 0.0  ;;  %vm3972_vm1 = vnez %v3906_v6 }
  0x47   :  { %v3970_v48 = vsel %vm2844_vm7, 4294967295, %v3969_v48  ;;  %v135_v60 = vsel %vm3971_vm13, %v2139_v61, 0.0  ;;  %v2089_v53 = vsel %vm3972_vm1, 1065353216, %v2087_v25  ;;  %vm3973_vm10 = vcmp.eq.f32.partialorder %v2327_v1, 2139095040 }
  0x48   :  { %v2029_v51 = vsel %vm3973_vm10, %v2028_v31, %v2021_v34  ;;  %vm3974_vm4 = vcmp.eq.f32.partialorder %v2353_v13, 3212836864  ;;  %vm3975_vm8 = vcmp.eq.f32.partialorder %v2324_v0, 0  ;;  %vm3976_vm0 = vcmp.eq.f32.partialorder %v2378_v21, 1065353216 }
  0x49   :  { %v1979_v58 = vsel %vm3974_vm4, 1065353216, %v1977_v9  ;;  %vm2861_vm7 = vmor %vm3976_vm0, %vm3975_vm8  ;;  %v3977_v2 = vmov 0  ;;  %vm3979_vm13 = vcmp.lt.f32.partialorder %v2397_v26, 0  ;;  %v3980_v5 = vmov 0 }
  0x4a   :  { %v3978_v2 = vsel %vm2861_vm7, 4294967295, %v3977_v2  ;;  %vm2869_vm3 = vmand %vm3979_vm13, %vm2357_vm2  ;;  %v151_v6 = vmul.f32 %v135_v60, %v2330_v3  ;;  %vm3982_vm1 = vcmp.eq.f32.partialorder %v2324_v0, 1065353216  ;;  %vm3983_vm0 = vcmp.eq.f32.partialorder %v2345_v10, 2139095040 }
  0x4b   :  { %v3981_v5 = vsel %vm2869_vm3, 4294967295, %v3980_v5  ;;  %v2090_v31 = vsel %vm3982_vm1, %v2339_v7, %v2089_v53  ;;  %v2034_v9 = vsel %vm3983_vm0, %v2529_v52, %v2029_v51  ;;  %vm3984_vm10 = vnez %v3915_v16  ;;  %v2176_v53 = vpop.eup %2175 }
  0x4c   :  { %v1970_v46 = vsel %vm3984_vm10, 2143289344, %v2170_v50  ;;  %vm3985_vm13 = vcmp.gt.f32.partialorder %v2339_v7, 0.0  ;;  %vm3986_vm1 = vnez %v3922_v24  ;;  %vm3987_vm0 = vcmp.eq.f32.partialorder %v2353_v13, 0  ;;  %v2907_v24 = vld [vmem:[#allocation8 + $0x28] sm:$0xff]  ;;  %1196 = vmatprep.subr.mxu0 %v151_v6  ;;  %1324 = vmatprep.subr.mxu1 %v151_v6 }
  0x4d   :  { %v134_v3 = vsel %vm3985_vm13, %v2090_v31, 0.0  ;;  %v2038_v12 = vsel %vm3986_vm1, 2143289344, %v2034_v9  ;;  %v1972_v52 = vsel %vm3987_vm0, %v2409_v30, %v1970_v46  ;;  %vm3988_vm7 = vcmp.eq.f32.partialorder %v2378_v21, 3212836864  ;;  %1197 = vmatpush3.msra.mxu0 %v151_v6  ;;  %1340 = vmatpush3.msra.mxu1 %v151_v6 }
  0x4e   :  { %v1930_v16 = vsel %vm3988_vm7, 1065353216, %v1928_v42  ;;  %vm3989_vm8 = vcmp.lt.f32.partialorder %v2429_v35, 0  ;;  %v150_v39 = vmul.f32 %v134_v3, %v2332_v4  ;;  %v2040_v15 = vsel %vm2694_vm9, 1065353216, %v2038_v12  ;;  %v2178_v3 = vpop.eup %2177 }
  0x4f   :  { %vm2902_vm3 = vmand %vm3989_vm8, %vm2357_vm2  ;;  %vm3992_vm7 = vcmp.eq.f32.partialorder %v2327_v1, 2139095040  ;;  %vm3993_vm8 = vcmp.ne.f32.partialorder %v2397_v26, %v2397_v26  ;;  %v3994_v41 = vmov 0  ;;  %vm3996_vm0 = vcmp.eq.f32.partialorder %v2429_v35, 0 }
  0x50   :  { %v1980_v40 = vsel %vm3992_vm7, %v1979_v58, %v1972_v52  ;;  %vm2919_vm1 = vmor %vm3993_vm8, %vm2415_vm15  ;;  %vm3997_vm13 = vcmp.lt.f32.partialorder %v2324_v0, 0  ;;  %v1750_v32 = vmul.f32 %v2168_v47, %v2324_v0  ;;  %vm4000_vm9 = vcmp.eq.f32.partialorder %v2324_v0, 1065353216  ;;  %1198 = vmatprep.subr.mxu0 %v150_v39  ;;  %1325 = vmatprep.subr.mxu1 %v150_v39 }
  0x51   :  { %v3995_v41 = vsel %vm2919_vm1, 4294967295, %v3994_v41  ;;  %vm2927_vm4 = vmand %vm3997_vm13, %vm3996_vm0  ;;  %v2041_v42 = vsel %vm4000_vm9, %v2345_v10, %v2040_v15  ;;  %vm4001_vm7 = vcmp.eq.f32.partialorder %v2353_v13, 2139095040  ;;  %vm4003_vm8 = vcmp.eq.f32.partialorder %v2324_v0, 0  ;;  %1199 = vmatpush3.msra.mxu0 %v150_v39  ;;  %1341 = vmatpush3.msra.mxu1 %v150_v39 }
  0x52   :  { %v1985_v61 = vsel %vm4001_vm7, %v2602_v62, %v1980_v40  ;;  %vm4002_vm13 = vmor %vm2796_vm12, %vm2826_vm6  ;;  %vm4004_vm0 = vcmp.eq.f32.partialorder %v2397_v26, 1065353216  ;;  %vm4007_vm9 = vcmp.gt.f32.partialorder %v2429_v35, 1065353216  ;;  %vm4008_vm1 = vcmp.lt.f32.partialorder %v2324_v0, 0 }
  0x53   :  { %v1879_v25 = vsel %vm4002_vm13, 2139095040, %v2282_v29  ;;  %vm2948_vm10 = vmor %vm4004_vm0, %vm4003_vm8  ;;  %v1701_v18 = vmul.f32 %v2172_v28, %v2324_v0  ;;  %vm4011_vm6 = vcmp.gt.f32.partialorder %v2345_v10, 0.0  ;;  %v1989_v50 = vsel %vm2734_vm5, 2143289344, %v1985_v61  ;;  %v2180_v40 = vpop.eup %2179 }
  0x54   :  { %vm2956_vm7 = vmxor %vm4008_vm1, %vm4007_vm9  ;;  %v133_v34 = vsel %vm4011_vm6, %v2041_v42, 0.0  ;;  %2181 = vpow2.f32 %v1750_v32  ;;  %v2971_v60 = vand.u32 2147483647, %v2907_v24  ;;  %v1991_v43 = vsel %vm2755_vm11, 1065353216, %v1989_v50 }
  0x55   :  { %vm1829_vm1 = vmor %vm2927_vm4, %vm2956_vm7  ;;  %v149_v10 = vmul.f32 %v133_v34, %v2341_v8  ;;  %v1921_v51 = vsel %vm2782_vm14, 2143289344, %v2174_v57  ;;  %vm4012_vm13 = vcmp.ne.f32.partialorder %v2429_v35, %v2429_v35  ;;  %vm4015_vm11 = vcmp.eq.f32.partialorder %v2324_v0, 1065353216 }
  0x56   :  { %vm2984_vm8 = vmor %vm4012_vm13, %vm2415_vm15  ;;  %v1992_v8 = vsel %vm4015_vm11, %v2353_v13, %v1991_v43  ;;  %vm4016_vm14 = vcmp.eq.f32.partialorder %v2378_v21, 0  ;;  %vm4017_vm9 = vcmp.eq.f32.partialorder %v2324_v0, 0  ;;  %vm4018_vm6 = vcmp.eq.f32.partialorder %v2429_v35, 1065353216 }
  0x57   :  { %v1923_v59 = vsel %vm4016_vm14, %v2409_v30, %v1921_v51  ;;  %vm3000_vm5 = vmor %vm4018_vm6, %vm4017_vm9  ;;  %2183 = vpow2.f32 %v1701_v18  ;;  %1200 = vmatprep.subr.mxu0 %v149_v10  ;;  %1326 = vmatprep.subr.mxu1 %v149_v10  ;;  %vm4021_vm11 = vcmp.gt.f32.partialorder %v2353_v13, 0.0  ;;  %vm4022_vm14 = vcmp.eq.f32.partialorder %v2327_v1, 2139095040 }
  0x58   :  { %v132_v6 = vsel %vm4021_vm11, %v1992_v8, 0.0  ;;  %v1931_v31 = vsel %vm4022_vm14, %v1930_v16, %v1923_v59  ;;  %vm4023_vm0 = vcmp.eq.f32.partialorder %v2397_v26, 3212836864  ;;  %vm4024_vm9 = vcmp.lt.f32.partialorder %v2478_v44, 0  ;;  %1201 = vmatpush3.msra.mxu0 %v149_v10  ;;  %1342 = vmatpush3.msra.mxu1 %v149_v10  ;;  %v3218_v16 = vld [vmem:[#allocation8 + $0x18] sm:$0xff] }
  0x59   :  { %v1881_v9 = vsel %vm4023_vm0, 1065353216, %v1879_v25  ;;  %vm3016_vm6 = vmand %vm4024_vm9, %vm2357_vm2  ;;  %v1652_v28 = vmul.f32 %v2176_v53, %v2324_v0  ;;  %v148_v13 = vmul.f32 %v132_v6, %v2347_v11  ;;  %vm4027_vm11 = vcmp.eq.f32.partialorder %v2378_v21, 2139095040  ;;  %v3041_v11 = vld [vmem:[#allocation8 + $0x20] sm:$0xff] }
  0x5a   :  { %v1936_v12 = vsel %vm4027_vm11, %v2662_v23, %v1931_v31  ;;  %v1830_v52 = vsel %vm1829_vm1, 2139095040, %v2282_v29  ;;  %vm4028_vm14 = vcmp.eq.f32.partialorder %v2478_v44, 0  ;;  %vm4029_vm9 = vcmp.lt.f32.partialorder %v2324_v0, 0 }
  0x5b   :  { %vm3036_vm13 = vmand %vm4029_vm9, %vm4028_vm14  ;;  %2185 = vlog2.f32 %v2971_v60  ;;  %vm4032_vm11 = vnez %v3970_v48  ;;  %vm4033_vm0 = vnez %v3981_v5  ;;  %vm4034_vm4 = vcmp.gt.f32.partialorder %v2478_v44, 1065353216  ;;  %1202 = vmatprep.subr.mxu0 %v148_v13  ;;  %1327 = vmatprep.subr.mxu1 %v148_v13 }
  0x5c   :  { %v1940_v23 = vsel %vm4032_vm11, 2143289344, %v1936_v12  ;;  %v1872_v39 = vsel %vm4033_vm0, 2143289344, %v2178_v3  ;;  %vm4035_vm7 = vmmov %vm4029_vm9  ;;  %2187 = vpow2.f32 %v1652_v28  ;;  %vm4038_vm9 = vnez %v3978_v2  ;;  %1203 = vmatpush3.msra.mxu0 %v148_v13  ;;  %1343 = vmatpush3.msra.mxu1 %v148_v13 }
  0x5d   :  { %vm3051_vm1 = vmxor %vm4035_vm7, %vm4034_vm4  ;;  %v1942_v48 = vsel %vm4038_vm9, 1065353216, %v1940_v23  ;;  %vm4039_vm11 = vcmp.eq.f32.partialorder %v2397_v26, 0  ;;  %vm4040_vm9 = vcmp.eq.f32.partialorder %v2324_v0, 1065353216  ;;  %vm4042_vm0 = vcmp.eq.f32.partialorder %v2429_v35, 3212836864 }
  0x5e   :  { %v1874_v5 = vsel %vm4039_vm11, %v2409_v30, %v1872_v39  ;;  %v1943_v2 = vsel %vm4040_vm9, %v2378_v21, %v1942_v48  ;;  %vm4041_vm11 = vcmp.eq.f32.partialorder %v2327_v1, 2139095040  ;;  %v1832_v32 = vsel %vm4042_vm0, 1065353216, %v1830_v52 }
  0x5f   :  { %v1882_v4 = vsel %vm4041_vm11, %v1881_v9, %v1874_v5  ;;  %vm4043_vm7 = vcmp.ne.f32.partialorder %v2478_v44, %v2478_v44  ;;  %v4044_v42 = vmov 0  ;;  %v3085_v61 = vand.u32 2147483647, %v3041_v11 }
  0x60   :  { %vm3080_vm4 = vmor %vm4043_vm7, %vm2415_vm15  ;;  %vm4046_vm9 = vcmp.gt.f32.partialorder %v2378_v21, 0.0  ;;  %vm4047_vm11 = vcmp.eq.f32.partialorder %v2397_v26, 2139095040  ;;  %v1823_v18 = vsel %vm2902_vm3, 2143289344, %v2180_v40  ;;  %vm4048_vm0 = vcmp.eq.f32.partialorder %v2324_v0, 0 }
  0x61   :  { %v4045_v42 = vsel %vm3080_vm4, 4294967295, %v4044_v42  ;;  %v131_v25 = vsel %vm4046_vm9, %v1943_v2, 0.0  ;;  %v1887_v62 = vsel %vm4047_vm11, %v2710_v38, %v1882_v4  ;;  %vm4049_vm7 = vcmp.eq.f32.partialorder %v2478_v44, 1065353216  ;;  %v2182_v59 = vpop.eup %2181 }
  0x62   :  { %vm3098_vm14 = vmor %vm4049_vm7, %vm4048_vm0  ;;  %v147_v21 = vmul.f32 %v131_v25, %v2366_v17  ;;  %vm4052_vm9 = vnez %v3995_v41  ;;  %vm4053_vm3 = vcmp.eq.f32.partialorder %v2429_v35, 0  ;;  %vm4054_vm11 = vcmp.lt.f32.partialorder %v2533_v54, 0 }
  0x63   :  { %v1891_v38 = vsel %vm4052_vm9, 2143289344, %v1887_v62  ;;  %v1825_v7 = vsel %vm4053_vm3, %v2409_v30, %v1823_v18  ;;  %vm3114_vm0 = vmand %vm4054_vm11, %vm2357_vm2  ;;  %vm4058_vm9 = vcmp.eq.f32.partialorder %v2327_v1, 2139095040  ;;  %vm4060_vm12 = vcmp.eq.f32.partialorder %v2533_v54, 0 }
  0x64   :  { %vm4057_vm7 = vmmov %vm4054_vm11  ;;  %v1893_v41 = vsel %vm2948_vm10, 1065353216, %v1891_v38  ;;  %v1833_v50 = vsel %vm4058_vm9, %v1832_v32, %v1825_v7  ;;  %vm1741_vm10 = vcmp.ne.f32.partialorder %v2533_v54, %v2533_v54  ;;  %1204 = vmatprep.subr.mxu0 %v147_v21  ;;  %1328 = vmatprep.subr.mxu1 %v147_v21  ;;  %vm4064_vm9 = vcmp.eq.f32.partialorder %v2324_v0, 1065353216  ;;  %v2184_v3 = vpop.eup %2183 }
  0x65   :  { %v3122_v17 = vsel %vm4057_vm7, %v2436_v37, %v2371_v19  ;;  %vm4059_vm11 = vmor %vm3036_vm13, %vm3051_vm1  ;;  %vm4061_vm7 = vcmp.lt.f32.partialorder %v2324_v0, 0  ;;  %v1894_v47 = vsel %vm4064_vm9, %v2397_v26, %v1893_v41  ;;  %vm4065_vm13 = vcmp.eq.f32.partialorder %v2429_v35, 2139095040  ;;  %1205 = vmatpush3.msra.mxu0 %v147_v21  ;;  %1344 = vmatpush3.msra.mxu1 %v147_v21 }
  0x66   :  { %v1781_v53 = vsel %vm4059_vm11, 2139095040, %v2282_v29  ;;  %vm3139_vm4 = vmand %vm4061_vm7, %vm4060_vm12  ;;  %v1838_v43 = vsel %vm4065_vm13, %v2744_v49, %v1833_v50  ;;  %vm4066_vm1 = vcmp.gt.f32.partialorder %v2533_v54, 1065353216  ;;  %2189 = vlog2.f32 %v3085_v61 }
  0x67   :  { %vm4067_vm12 = vmmov %vm4061_vm7  ;;  %vm1670_vm7 = vcmp.lt.f32.partialorder %v2608_v63, 0  ;;  %vm4070_vm9 = vcmp.gt.f32.partialorder %v2397_v26, 0.0  ;;  %v1842_v49 = vsel %vm2984_vm8, 2143289344, %v1838_v43  ;;  %v1774_v22 = vsel %vm3016_vm6, 2143289344, %v2182_v59 }
  0x68   :  { %vm3155_vm11 = vmxor %vm4067_vm12, %vm4066_vm1  ;;  %v130_v8 = vsel %vm4070_vm9, %v1894_v47, 0.0  ;;  %vm1671_vm12 = vcmp.eq.f32.partialorder %v2608_v63, 0  ;;  %v1844_v26 = vsel %vm3000_vm5, 1065353216, %v1842_v49  ;;  %vm4071_vm9 = vcmp.eq.f32.partialorder %v2478_v44, 3212836864  ;;  %v3303_v47 = vld [vmem:[#allocation8 + $0x10] sm:$0xff] }
  0x69   :  { %vm1731_vm1 = vmor %vm3139_vm4, %vm3155_vm11  ;;  %v146_v6 = vmul.f32 %v130_v8, %v2374_v20  ;;  %v1783_v58 = vsel %vm4071_vm9, 1065353216, %v1781_v53  ;;  %vm4074_vm4 = vcmp.eq.f32.partialorder %v2324_v0, 1065353216  ;;  %vm4075_vm5 = vcmp.eq.f32.partialorder %v2324_v0, 0 }
  0x6a   :  { %v1732_v31 = vsel %vm1731_vm1, 2139095040, %v2282_v29  ;;  %vm3183_vm8 = vmor %vm1741_vm10, %vm2415_vm15  ;;  %v1845_v20 = vsel %vm4074_vm4, %v2429_v35, %v1844_v26  ;;  %vm4076_vm11 = vcmp.eq.f32.partialorder %v2533_v54, 1065353216  ;;  %vm1673_vm10 = vcmp.gt.f32.partialorder %v2608_v63, 1065353216 }
  0x6b   :  { %vm3196_vm1 = vmor %vm4076_vm11, %vm4075_vm5  ;;  %1206 = vmatprep.subr.mxu0 %v146_v6  ;;  %1329 = vmatprep.subr.mxu1 %v146_v6  ;;  %vm4079_vm4 = vcmp.gt.f32.partialorder %v2429_v35, 0.0  ;;  %vm4080_vm6 = vcmp.eq.f32.partialorder %v2478_v44, 0  ;;  %vm4081_vm13 = vcmp.eq.f32.partialorder %v2533_v54, 3212836864  ;;  %vm1684_vm11 = vcmp.eq.f32.partialorder %v2608_v63, 3212836864 }
  0x6c   :  { %v129_v13 = vsel %vm4079_vm4, %v1845_v20, 0.0  ;;  %v1776_v46 = vsel %vm4080_vm6, %v2409_v30, %v1774_v22  ;;  %v1734_v12 = vsel %vm4081_vm13, 1065353216, %v1732_v31  ;;  %vm3213_vm5 = vmand %vm1670_vm7, %vm2357_vm2  ;;  %1207 = vmatpush3.msra.mxu0 %v146_v6  ;;  %1345 = vmatpush3.msra.mxu1 %v146_v6  ;;  %vm4084_vm4 = vcmp.eq.f32.partialorder %v2327_v1, 2139095040  ;;  %v3346_v22 = vld [vmem:[#allocation8 + $0x8] sm:$0xff] }
  0x6d   :  { %v145_v35 = vmul.f32 %v129_v13, %v2399_v27  ;;  %v1784_v23 = vsel %vm4084_vm4, %v1783_v58, %v1776_v46  ;;  %v1725_v39 = vsel %vm3114_vm0, 2143289344, %v2184_v3  ;;  %vm4085_vm13 = vcmp.lt.f32.partialorder %v2324_v0, 0  ;;  %v2186_v27 = vpop.eup %2185 }
  0x6e   :  { %vm3229_vm6 = vmand %vm4085_vm13, %vm1671_vm12  ;;  %v1690_v48 = vsel %vm1670_vm7, %v2436_v37, %v2371_v19  ;;  %vm4088_vm4 = vcmp.eq.f32.partialorder %v2478_v44, 2139095040  ;;  %vm4089_vm0 = vcmp.eq.f32.partialorder %v2533_v54, 0  ;;  %vm1692_vm7 = vcmp.ne.f32.partialorder %v2608_v63, %v2608_v63  ;;  %v2188_v4 = vpop.eup %2187 }
  0x6f   :  { %v1789_v5 = vsel %vm4088_vm4, %v2806_v56, %v1784_v23  ;;  %v1727_v40 = vsel %vm4089_vm0, %v2409_v30, %v1725_v39  ;;  %vm3247_vm9 = vmxor %vm4085_vm13, %vm1673_vm10  ;;  %vm1622_vm3 = vcmp.eq.f32.partialorder %v2971_v60, 0  ;;  %1208 = vmatprep.subr.mxu0 %v145_v35  ;;  %1330 = vmatprep.subr.mxu1 %v145_v35  ;;  %vm4092_vm4 = vnez %v4045_v42 }
  0x70   :  { %v1793_v56 = vsel %vm4092_vm4, 2143289344, %v1789_v5  ;;  %vm4093_vm0 = vcmp.eq.f32.partialorder %v2327_v1, 2139095040  ;;  %vm1682_vm10 = vmor %vm3229_vm6, %vm3247_vm9  ;;  %v1603_v25 = vmul.f32 %v2186_v27, %v2324_v0  ;;  %v3264_v62 = vand.u32 2147483647, %v3218_v16  ;;  %1209 = vmatpush3.msra.mxu0 %v145_v35  ;;  %1346 = vmatpush3.msra.mxu1 %v145_v35 }
  0x71   :  { %v1735_v32 = vsel %vm4093_vm0, %v1734_v12, %v1727_v40  ;;  %v1795_v18 = vsel %vm3098_vm14, 1065353216, %v1793_v56  ;;  %vm4094_vm13 = vcmp.eq.f32.partialorder %v2533_v54, 2139095040  ;;  %v1676_v21 = vsel %vm3213_vm5, 2143289344, %v2188_v4  ;;  %vm3289_vm14 = vmor %vm1692_vm7, %vm2415_vm15 }
  0x72   :  { %v1740_v42 = vsel %vm4094_vm13, %v3122_v17, %v1735_v32  ;;  %v1683_v38 = vsel %vm1682_vm10, 2139095040, %v2282_v29  ;;  %vm4095_vm9 = vcmp.eq.f32.partialorder %v2324_v0, 1065353216  ;;  %v1678_v57 = vsel %vm1671_vm12, %v2409_v30, %v1676_v21  ;;  %vm4099_vm12 = vmmov %vm4093_vm0 }
  0x73   :  { %v1796_v7 = vsel %vm4095_vm9, %v2478_v44, %v1795_v18  ;;  %v1744_v34 = vsel %vm3183_vm8, 2143289344, %v1740_v42  ;;  %v1685_v41 = vsel %vm1684_vm11, 1065353216, %v1683_v38  ;;  %vm4098_vm5 = vcmp.gt.f32.partialorder %v2478_v44, 0.0  ;;  %vm4102_vm7 = vmmov %vm4095_vm9 }
  0x74   :  { %v128_v50 = vsel %vm4098_vm5, %v1796_v7, 0.0  ;;  %v1746_v53 = vsel %vm3196_vm1, 1065353216, %v1744_v34  ;;  %v1686_v10 = vsel %vm4099_vm12, %v1685_v41, %v1678_v57  ;;  %vm4100_vm8 = vcmp.eq.f32.partialorder %v2324_v0, 0 }
  0x75   :  { %vm4101_vm11 = vcmp.eq.f32.partialorder %v2608_v63, 1065353216  ;;  %2191 = vpow2.f32 %v1603_v25  ;;  %v144_v43 = vmul.f32 %v128_v50, %v2431_v36  ;;  %v1747_v44 = vsel %vm4102_vm7, %v2533_v54, %v1746_v53  ;;  %v2190_v36 = vpop.eup %2189 }
  0x76   :  { %vm1696_vm6 = vmor %vm4101_vm11, %vm4100_vm8  ;;  %vm4103_vm4 = vcmp.eq.f32.partialorder %v2608_v63, 2139095040  ;;  %vm1624_vm1 = vcmp.gt.f32.partialorder %v2971_v60, 1065353216  ;;  %vm4104_vm0 = vcmp.gt.f32.partialorder %v2533_v54, 0.0  ;;  %vm92_vm10 = vcmp.gt.f32.partialorder %v2608_v63, 0.0 }
  0x77   :  { %v1691_v51 = vsel %vm4103_vm4, %v1690_v48, %v1686_v10  ;;  %v127_v8 = vsel %vm4104_vm0, %v1747_v44, 0.0  ;;  %2193 = vlog2.f32 %v3264_v62  ;;  %1210 = vmatprep.subr.mxu0 %v144_v43  ;;  %1331 = vmatprep.subr.mxu1 %v144_v43  ;;  %vm4105_vm13 = vcmp.lt.f32.partialorder %v2324_v0, 0  ;;  %v339_v48 = vld [vmem:[#allocation5 + $0x138] sm:$0xff] }
  0x78   :  { %v1695_v49 = vsel %vm3289_vm14, 2143289344, %v1691_v51  ;;  %v143_v59 = vmul.f32 %v127_v8, %v2480_v45  ;;  %vm3323_vm9 = vmand %vm4105_vm13, %vm1622_vm3  ;;  %v3328_v26 = vand.u32 2147483647, %v3303_v47  ;;  %1211 = vmatpush3.msra.mxu0 %v144_v43  ;;  %1347 = vmatpush3.msra.mxu1 %v144_v43  ;;  %v1554_v31 = vmul.f32 %v2190_v36, %v2324_v0 }
  0x79   :  { %v1697_v6 = vsel %vm1696_vm6, 1065353216, %v1695_v49  ;;  %vm4108_vm14 = vmmov %vm4102_vm7  ;;  %vm1573_vm8 = vcmp.eq.f32.partialorder %v3085_v61, 0  ;;  %vm1575_vm6 = vcmp.gt.f32.partialorder %v3085_v61, 1065353216  ;;  %vm1621_vm7 = vcmp.lt.f32.partialorder %v2971_v60, 0 }
  0x7a   :  { %v1698_v58 = vsel %vm4108_vm14, %v2608_v63, %v1697_v6  ;;  %vm4109_vm5 = vmmov %vm4105_vm13  ;;  %1212 = vmatprep.subr.mxu0 %v143_v59  ;;  %1332 = vmatprep.subr.mxu1 %v143_v59  ;;  %2195 = vpow2.f32 %v1554_v31  ;;  %v3354_v63 = vld [vmem:[#allocation8] sm:$0xff]  ;;  %v3366_v28 = vand.u32 2147483647, %v3346_v22  ;;  %vm1635_vm0 = vcmp.eq.f32.partialorder %v2971_v60, 3212836864 }
  0x7b   :  { %vm3337_vm12 = vmxor %vm4109_vm5, %vm1624_vm1  ;;  %v126_v9 = vsel %vm92_vm10, %v1698_v58, 0.0  ;;  %1213 = vmatpush3.msra.mxu0 %v143_v59  ;;  %1348 = vmatpush3.msra.mxu1 %v143_v59  ;;  %2197 = vlog2.f32 %v3328_v26  ;;  %v3377_v46 = vand.u32 2147483647, %v3354_v63  ;;  %vm1643_vm14 = vcmp.ne.f32.partialorder %v2971_v60, %v2971_v60 }
  0x7c   :  { %v142_v20 = vmul.f32 %v126_v9, %v2535_v55  ;;  %vm1633_vm11 = vmor %vm3323_vm9, %vm3337_vm12  ;;  %2199 = vlog2.f32 %v3366_v28  ;;  %vm1625_vm12 = vcmp.eq.f32.partialorder %v2971_v60, 2139095040  ;;  %v1641_v23 = vsel %vm1621_vm7, %v2436_v37, %v2371_v19 }
  0x7d   :  { %vm4112_vm4 = vmmov %vm4109_vm5  ;;  %v1634_v3 = vsel %vm1633_vm11, 2139095040, %v2282_v29  ;;  %vm1623_vm5 = vcmp.eq.f32.partialorder %v2971_v60, 1065353216  ;;  %2201 = vlog2.f32 %v3377_v46  ;;  %v4154_v55 = vmov 0 }
  0x7e   :  { %1214 = vmatprep.subr.mxu0 %v142_v20  ;;  %1333 = vmatprep.subr.mxu1 %v142_v20  ;;  %vm3361_vm1 = vmand %vm4112_vm4, %vm1573_vm8  ;;  %v1636_v52 = vsel %vm1635_vm0, 1065353216, %v1634_v3  ;;  %vm4120_vm0 = vcmp.eq.f32.partialorder %v2327_v1, 2139095040 }
  0x7f   :  { %1215 = vmatpush3.msra.mxu0 %v142_v20  ;;  %1349 = vmatpush3.msra.mxu1 %v142_v20  ;;  %vm4115_vm10 = vmmov %vm4112_vm4 }
  0x80   :  { %vm3372_vm13 = vmxor %vm4115_vm10, %vm1575_vm6  ;;  %vm1572_vm6 = vcmp.lt.f32.partialorder %v3085_v61, 0 }
  0x81   :  { %vm1626_vm9 = vmand %vm1621_vm7, %vm2357_vm2  ;;  %vm4121_vm7 = vcmp.eq.f32.partialorder %v2324_v0, 0  ;;  %v1592_v34 = vsel %vm1572_vm6, %v2436_v37, %v2371_v19 }
  0x82   :  { %v2192_v12 = vpop.eup %2191  ;;  %vm1584_vm11 = vmor %vm3361_vm1, %vm3372_vm13  ;;  %vm1586_vm1 = vcmp.eq.f32.partialorder %v3085_v61, 3212836864  ;;  %vm1594_vm13 = vcmp.ne.f32.partialorder %v3085_v61, %v3085_v61 }
  0x83   :  { %v1627_v35 = vsel %vm1626_vm9, 2143289344, %v2192_v12  ;;  %vm3403_vm4 = vmor %vm1643_vm14, %vm2415_vm15  ;;  %v1585_v5 = vsel %vm1584_vm11, 2139095040, %v2282_v29  ;;  %vm3855_vm9 = vcmp.eq.f32.partialorder %v3264_v62, 0  ;;  %vm91_vm14 = vcmp.gt.f32.partialorder %v2971_v60, 0.0 }
  0x84   :  { %v2194_v39 = vpop.eup %2193  ;;  %v1629_v15 = vsel %vm1622_vm3, %v2409_v30, %v1627_v35  ;;  %vm1647_vm10 = vmor %vm1623_vm5, %vm4121_vm7  ;;  %vm1526_vm5 = vcmp.gt.f32.partialorder %v3264_v62, 1065353216  ;;  %vm1576_vm11 = vcmp.eq.f32.partialorder %v3085_v61, 2139095040  ;;  %v1587_v18 = vsel %vm1586_vm1, 1065353216, %v1585_v5  ;;  %v340_v5 = vld [vmem:[#allocation5 + $0x140] sm:$0xff] }
  0x85   :  { %v1637_v27 = vsel %vm4120_vm0, %v1636_v52, %v1629_v15  ;;  %v1505_v40 = vmul.f32 %v2194_v39, %v2324_v0  ;;  %vm3422_vm3 = vmand %vm1572_vm6, %vm2357_vm2  ;;  %vm3856_vm1 = vcmp.lt.f32.partialorder %v3264_v62, 0  ;;  %vm4127_vm7 = vcmp.lt.f32.partialorder %v2324_v0, 0  ;;  %v336_v52 = vld [vmem:[#allocation5 + $0x120] sm:$0xff] }
  0x86   :  { %v1642_v2 = vsel %vm1625_vm12, %v1641_v23, %v1637_v27  ;;  %vm1574_vm12 = vcmp.eq.f32.partialorder %v3085_v61, 1065353216  ;;  %vm3437_vm0 = vmor %vm1594_vm13, %vm2415_vm15 }
  0x87   :  { %v1646_v56 = vsel %vm3403_vm4, 2143289344, %v1642_v2  ;;  %2203 = vpow2.f32 %v1505_v40  ;;  %v2196_v32 = vpop.eup %2195  ;;  %vm4126_vm4 = vcmp.eq.f32.partialorder %v2324_v0, 1065353216  ;;  %vm4130_vm6 = vmmov %vm4127_vm7 }
  0x88   :  { %v1648_v25 = vsel %vm1647_vm10, 1065353216, %v1646_v56  ;;  %v2198_v21 = vpop.eup %2197  ;;  %v1578_v7 = vsel %vm3422_vm3, 2143289344, %v2196_v32  ;;  %vm3455_vm10 = vmand %vm4127_vm7, %vm3855_vm9  ;;  %vm4133_vm3 = vcmp.eq.f32.partialorder %v2327_v1, 2139095040  ;;  %vm4141_vm9 = vcmp.eq.f32.partialorder %v2324_v0, 1065353216 }
  0x89   :  { %v1649_v38 = vsel %vm4126_vm4, %v2971_v60, %v1648_v25  ;;  %v1580_v17 = vsel %vm1573_vm8, %v2409_v30, %v1578_v7  ;;  %vm3468_vm13 = vmxor %vm4130_vm6, %vm1526_vm5  ;;  %v1456_v53 = vmul.f32 %v2198_v21, %v2324_v0  ;;  %vm1545_vm5 = vcmp.ne.f32.partialorder %v3264_v62, %v3264_v62  ;;  %v2200_v51 = vpop.eup %2199  ;;  %v343_v25 = vld [vmem:[#allocation5 + $0x158] sm:$0xff] }
  0x8a   :  { %v125_v41 = vsel %vm91_vm14, %v1649_v38, 0.0  ;;  %v1588_v60 = vsel %vm4133_vm3, %v1587_v18, %v1580_v17  ;;  %vm4134_vm14 = vcmp.eq.f32.partialorder %v2324_v0, 0  ;;  %vm1525_vm4 = vcmp.eq.f32.partialorder %v3264_v62, 1065353216  ;;  %vm3493_vm7 = vmand %vm3856_vm1, %vm2357_vm2  ;;  %v2202_v45 = vpop.eup %2201 }
  0x8b   :  { %v141_v10 = vmul.f32 %v125_v41, %v2907_v24  ;;  %vm3480_vm8 = vmor %vm1574_vm12, %vm4134_vm14  ;;  %v1593_v44 = vsel %vm1576_vm11, %v1592_v34, %v1588_v60  ;;  %2205 = vpow2.f32 %v1456_v53  ;;  %vm3859_vm12 = vcmp.eq.f32.partialorder %v3328_v26, 0  ;;  %v346_v34 = vld [vmem:[#allocation5 + $0x170] sm:$0xff] }
  0x8c   :  { %vm90_vm6 = vcmp.gt.f32.partialorder %v3085_v61, 0.0  ;;  %v1597_v8 = vsel %vm3437_vm0, 2143289344, %v1593_v44  ;;  %vm1477_vm3 = vcmp.gt.f32.partialorder %v3328_v26, 1065353216  ;;  %vm3513_vm14 = vmor %vm1545_vm5, %vm2415_vm15  ;;  %v1407_v59 = vmul.f32 %v2200_v51, %v2324_v0 }
  0x8d   :  { %1216 = vmatprep.subr.mxu0 %v141_v10  ;;  %1334 = vmatprep.subr.mxu1 %v141_v10  ;;  %v1599_v49 = vsel %vm3480_vm8, 1065353216, %v1597_v8  ;;  %vm4142_vm1 = vcmp.eq.f32.partialorder %v2324_v0, 0  ;;  %vm4145_vm5 = vcmp.lt.f32.partialorder %v2324_v0, 0  ;;  %vm1428_vm0 = vcmp.gt.f32.partialorder %v3366_v28, 1065353216 }
  0x8e   :  { %1217 = vmatpush3.msra.mxu0 %v141_v10  ;;  %1350 = vmatpush3.msra.mxu1 %v141_v10  ;;  %v1600_v6 = vsel %vm4141_vm9, %v3085_v61, %v1599_v49  ;;  %vm3526_vm8 = vmor %vm1525_vm4, %vm4142_vm1  ;;  %2207 = vpow2.f32 %v1407_v59  ;;  %v1358_v3 = vmul.f32 %v2202_v45, %v2324_v0 }
  0x8f   :  { %vm3534_vm11 = vmand %vm4145_vm5, %vm3859_vm12  ;;  %v124_v61 = vsel %vm90_vm6, %v1600_v6, 0.0  ;;  %vm3860_vm6 = vcmp.lt.f32.partialorder %v3328_v26, 0 }
  0x90   :  { %vm4148_vm15 = vmmov %vm4145_vm5  ;;  %v140_v9 = vmul.f32 %v124_v61, %v3041_v11  ;;  %vm4152_vm5 = vcmp.eq.f32.partialorder %v3366_v28, 0  ;;  %2209 = vpow2.f32 %v1358_v3  ;;  %v301_v3 = vld [vmem:[#allocation5 + $0x8] sm:$0xff] }
  0x91   :  { %vm3542_vm1 = vmxor %vm4148_vm15, %vm1477_vm3  ;;  %v333_v11 = vld [vmem:[#allocation5 + $0x108] sm:$0xff] }
  0x92   :  { %vm4151_vm4 = vmor %vm3455_vm10, %vm3468_vm13  ;;  %1218 = vmatprep.subr.mxu0 %v140_v9  ;;  %1335 = vmatprep.subr.mxu1 %v140_v9  ;;  %vm3865_vm13 = vcmp.eq.f32.partialorder %v3377_v46, 0 }
  0x93   :  { %v1536_v20 = vsel %vm4151_vm4, 2139095040, %v2282_v29  ;;  %vm4153_vm12 = vmmov %vm4148_vm15  ;;  %1219 = vmatpush3.msra.mxu0 %v140_v9  ;;  %1351 = vmatpush3.msra.mxu1 %v140_v9  ;;  %vm1379_vm4 = vcmp.gt.f32.partialorder %v3377_v46, 1065353216 }
  0x94   :  { %vm3558_vm15 = vmand %vm4153_vm12, %vm4152_vm5  ;;  %v2204_v13 = vpop.eup %2203  ;;  %vm89_vm5 = vcmp.gt.f32.partialorder %v3264_v62, 0.0 }
  0x95   :  { %v4155_v55 = vsel %vm3558_vm15, 4294967295, %v4154_v55  ;;  %vm4156_vm3 = vmmov %vm4153_vm12  ;;  %vm4159_vm12 = vcmp.eq.f32.partialorder %v3264_v62, 3212836864  ;;  %v1529_v35 = vsel %vm3493_vm7, 2143289344, %v2204_v13  ;;  %vm1496_vm7 = vcmp.ne.f32.partialorder %v3328_v26, %v3328_v26  ;;  %v302_v13 = vld [vmem:[#allocation5 + $0x10] sm:$0xff] }
  0x96   :  { %vm3565_vm9 = vmxor %vm4156_vm3, %vm1428_vm0  ;;  %v1538_v12 = vsel %vm4159_vm12, 1065353216, %v1536_v20  ;;  %vm4163_vm3 = vcmp.eq.f32.partialorder %v3264_v62, 0  ;;  %vm1488_vm12 = vcmp.eq.f32.partialorder %v3328_v26, 3212836864  ;;  %vm1476_vm15 = vcmp.eq.f32.partialorder %v3328_v26, 1065353216 }
  0x97   :  { %vm1486_vm10 = vmor %vm3534_vm11, %vm3542_vm1  ;;  %vm1527_vm11 = vcmp.eq.f32.partialorder %v3264_v62, 2139095040  ;;  %vm4162_vm1 = vcmp.lt.f32.partialorder %v3264_v62, 0  ;;  %v1531_v39 = vsel %vm4163_vm3, %v2409_v30, %v1529_v35  ;;  %v337_v35 = vld [vmem:[#allocation5 + $0x128] sm:$0xff] }
  0x98   :  { %vm3580_vm0 = vmand %vm3860_vm6, %vm2357_vm2  ;;  %v1543_v23 = vsel %vm4162_vm1, %v2436_v37, %v2371_v19  ;;  %v1487_v15 = vsel %vm1486_vm10, 2139095040, %v2282_v29  ;;  %vm4164_vm1 = vcmp.lt.f32.partialorder %v2324_v0, 0  ;;  %vm4167_vm2 = vcmp.eq.f32.partialorder %v2327_v1, 2139095040  ;;  %v2206_v2 = vpop.eup %2205 }
  0x99   :  { %vm3607_vm6 = vmand %vm4164_vm1, %vm3865_vm13  ;;  %v1539_v27 = vsel %vm4167_vm2, %v1538_v12, %v1531_v39  ;;  %vm1478_vm13 = vcmp.eq.f32.partialorder %v3328_v26, 2139095040  ;;  %v1489_v56 = vsel %vm1488_vm12, 1065353216, %v1487_v15  ;;  %vm4171_vm2 = vcmp.lt.f32.partialorder %v3328_v26, 0  ;;  %v334_v12 = vld [vmem:[#allocation5 + $0x110] sm:$0xff]  ;;  %v307_v15 = vld [vmem:[#allocation5 + $0x38] sm:$0xff] }
  0x9a   :  { %vm4168_vm10 = vmmov %vm4164_vm1  ;;  %v1544_v40 = vsel %vm1527_vm11, %v1543_v23, %v1539_v27  ;;  %vm1425_vm1 = vcmp.lt.f32.partialorder %v3366_v28, 0  ;;  %v1494_v32 = vsel %vm4171_vm2, %v2436_v37, %v2371_v19  ;;  %v1480_v42 = vsel %vm3580_vm0, 2143289344, %v2206_v2  ;;  %v306_v23 = vld [vmem:[#allocation5 + $0x30] sm:$0xff]  ;;  %v308_v27 = vld [vmem:[#allocation5 + $0x40] sm:$0xff] }
  0x9b   :  { %vm3616_vm3 = vmxor %vm4168_vm10, %vm1379_vm4  ;;  %v1548_v4 = vsel %vm3513_vm14, 2143289344, %v1544_v40  ;;  %vm4172_vm4 = vnez %v3875_v33  ;;  %vm4175_vm14 = vnez %v4155_v55  ;;  %vm1439_vm2 = vcmp.eq.f32.partialorder %v3366_v28, 3212836864  ;;  %v2208_v17 = vpop.eup %2207  ;;  %v338_v39 = vld [vmem:[#allocation5 + $0x130] sm:$0xff]  ;;  %v309_v40 = vld [vmem:[#allocation5 + $0x48] sm:$0xff] }
  0x9c   :  { %vm3632_vm11 = vmor %vm1496_vm7, %vm4172_vm4  ;;  %v1550_v18 = vsel %vm3526_vm8, 1065353216, %v1548_v4  ;;  %vm4178_vm8 = vcmp.eq.f32.partialorder %v2324_v0, 1065353216  ;;  %vm4179_vm0 = vcmp.eq.f32.partialorder %v3328_v26, 0  ;;  %v1445_v44 = vsel %vm1425_vm1, %v2436_v37, %v2371_v19  ;;  %v341_v2 = vld [vmem:[#allocation5 + $0x148] sm:$0xff]  ;;  %v310_v4 = vld [vmem:[#allocation5 + $0x50] sm:$0xff] }
  0x9d   :  { %vm4176_vm12 = vmmov %vm3565_vm9  ;;  %v1551_v38 = vsel %vm4178_vm8, %v3264_v62, %v1550_v18  ;;  %v1482_v7 = vsel %vm4179_vm0, %v2409_v30, %v1480_v42  ;;  %vm1447_vm0 = vcmp.ne.f32.partialorder %v3366_v28, %v3366_v28  ;;  %vm1390_vm9 = vcmp.eq.f32.partialorder %v3377_v46, 3212836864  ;;  %v2210_v51 = vpop.eup %2209  ;;  %v312_v18 = vld [vmem:[#allocation5 + $0x60] sm:$0xff] }
  0x9e   :  { %vm4177_vm10 = vmor %vm4175_vm14, %vm4176_vm12  ;;  %vm4180_vm14 = vnez %v3867_v14  ;;  %v123_v57 = vsel %vm89_vm5, %v1551_v38, 0.0  ;;  %vm1429_vm5 = vcmp.eq.f32.partialorder %v3366_v28, 2139095040  ;;  %v344_v42 = vld [vmem:[#allocation5 + $0x160] sm:$0xff]  ;;  %v345_v38 = vld [vmem:[#allocation5 + $0x168] sm:$0xff] }
  0x9f   :  { %v1438_v21 = vsel %vm4177_vm10, 2139095040, %v2282_v29  ;;  %vm1388_vm7 = vmor %vm3607_vm6, %vm3616_vm3  ;;  %vm1376_vm6 = vcmp.lt.f32.partialorder %v3377_v46, 0  ;;  %vm4183_vm3 = vcmp.eq.f32.partialorder %v2327_v1, 2139095040  ;;  %vm4184_vm10 = vcmp.eq.f32.partialorder %v2324_v0, 0  ;;  %v353_v14 = vld [vmem:[#allocation5 + $0x1a8] sm:$0xff] }
  0xa0   :  { %vm3662_vm12 = vmand %vm1425_vm1, %vm4180_vm14  ;;  %v1490_v41 = vsel %vm4183_vm3, %v1489_v56, %v1482_v7  ;;  %v139_v50 = vmul.f32 %v123_v57, %v3218_v16  ;;  %v1440_v53 = vsel %vm1439_vm2, 1065353216, %v1438_v21  ;;  %v1389_v10 = vsel %vm1388_vm7, 2139095040, %v2282_v29  ;;  %v342_v56 = vld [vmem:[#allocation5 + $0x150] sm:$0xff]  ;;  %v313_v21 = vld [vmem:[#allocation5 + $0x68] sm:$0xff] }
  0xa1   :  { %vm1500_vm8 = vmor %vm1476_vm15, %vm4184_vm10  ;;  %v1495_v62 = vsel %vm1478_vm13, %v1494_v32, %v1490_v41  ;;  %v1431_v43 = vsel %vm3662_vm12, 2143289344, %v2208_v17  ;;  %vm4187_vm13 = vcmp.eq.f32.partialorder %v3366_v28, 0  ;;  %vm1398_vm2 = vcmp.ne.f32.partialorder %v3377_v46, %v3377_v46  ;;  %v311_v32 = vld [vmem:[#allocation5 + $0x58] sm:$0xff]  ;;  %v314_v7 = vld [vmem:[#allocation5 + $0x70] sm:$0xff] }
  0xa2   :  { %v1499_v60 = vsel %vm3632_vm11, 2143289344, %v1495_v62  ;;  %vm3695_vm15 = vmand %vm1376_vm6, %vm4180_vm14  ;;  %1220 = vmatprep.subr.mxu0 %v139_v50  ;;  %1336 = vmatprep.subr.mxu1 %v139_v50  ;;  %v1433_v24 = vsel %vm4187_vm13, %v2409_v30, %v1431_v43  ;;  %vm1378_vm11 = vcmp.eq.f32.partialorder %v3377_v46, 1065353216  ;;  %vm4190_vm7 = vcmp.eq.f32.partialorder %v2324_v0, 1065353216  ;;  %v315_v57 = vld [vmem:[#allocation5 + $0x78] sm:$0xff]  ;;  %v316_v17 = vld [vmem:[#allocation5 + $0x80] sm:$0xff] }
  0xa3   :  { %v1501_v29 = vsel %vm1500_vm8, 1065353216, %v1499_v60  ;;  %vm3707_vm1 = vmor %vm1447_vm0, %vm4172_vm4  ;;  %1221 = vmatpush3.msra.mxu0 %v139_v50  ;;  %1352 = vmatpush3.msra.mxu1 %v139_v50  ;;  %vm1380_vm8 = vcmp.eq.f32.partialorder %v3377_v46, 2139095040  ;;  %v1391_v36 = vsel %vm1390_vm9, 1065353216, %v1389_v10  ;;  %vm4194_vm0 = vcmp.gt.f32.partialorder %v3328_v26, 0.0  ;;  %v347_v41 = vld [vmem:[#allocation5 + $0x178] sm:$0xff]  ;;  %v348_v50 = vld [vmem:[#allocation5 + $0x180] sm:$0xff] }
  0xa4   :  { %v1502_v8 = vsel %vm4190_vm7, %v3328_v26, %v1501_v29  ;;  %vm4191_vm14 = vmmov %vm4183_vm3  ;;  %vm4193_vm3 = vcmp.eq.f32.partialorder %v3366_v28, 1065353216  ;;  %v1382_v54 = vsel %vm3695_vm15, 2143289344, %v2210_v51  ;;  %v1396_v58 = vsel %vm1376_vm6, %v2436_v37, %v2371_v19  ;;  %v317_v62 = vld [vmem:[#allocation5 + $0x88] sm:$0xff]  ;;  %v318_v10 = vld [vmem:[#allocation5 + $0x90] sm:$0xff] }
  0xa5   :  { %v1441_v49 = vsel %vm4191_vm14, %v1440_v53, %v1433_v24  ;;  %vm4192_vm12 = vmmov %vm4184_vm10  ;;  %v122_v59 = vsel %vm4194_vm0, %v1502_v8, 0.0  ;;  %vm87_vm13 = vcmp.gt.f32.partialorder %v3366_v28, 0.0  ;;  %vm4195_vm9 = vcmp.eq.f32.partialorder %v3377_v46, 0  ;;  %v349_v53 = vld [vmem:[#allocation5 + $0x188] sm:$0xff]  ;;  %v350_v60 = vld [vmem:[#allocation5 + $0x190] sm:$0xff] }
  0xa6   :  { %vm1451_vm10 = vmor %vm4193_vm3, %vm4192_vm12  ;;  %v1446_v6 = vsel %vm1429_vm5, %v1445_v44, %v1441_v49  ;;  %v138_v45 = vmul.f32 %v122_v59, %v3303_v47  ;;  %v1384_v26 = vsel %vm4195_vm9, %v2409_v30, %v1382_v54  ;;  %v319_v43 = vld [vmem:[#allocation5 + $0x98] sm:$0xff]  ;;  %v320_v16 = vld [vmem:[#allocation5 + $0xa0] sm:$0xff] }
  0xa7   :  { %v1450_v61 = vsel %vm3707_vm1, 2143289344, %v1446_v6  ;;  %vm1400_vm5 = vmor %vm1398_vm2, %vm4172_vm4  ;;  %vm4198_vm1 = vcmp.eq.f32.partialorder %v2324_v0, 1065353216  ;;  %vm86_vm4 = vcmp.gt.f32.partialorder %v3377_v46, 0.0  ;;  %v303_v0 = vld [vmem:[#allocation5 + $0x18] sm:$0xff]  ;;  %v352_v29 = vld [vmem:[#allocation5 + $0x1a0] sm:$0xff] }
  0xa8   :  { %v1452_v31 = vsel %vm1451_vm10, 1065353216, %v1450_v61  ;;  %vm4196_vm6 = vmmov %vm4191_vm14  ;;  %1222 = vmatprep.subr.mxu0 %v138_v45  ;;  %1337 = vmatprep.subr.mxu1 %v138_v45  ;;  %v351_v44 = vld [vmem:[#allocation5 + $0x198] sm:$0xff]  ;;  %v321_v24 = vld [vmem:[#allocation5 + $0xa8] sm:$0xff] }
  0xa9   :  { %v1392_v19 = vsel %vm4196_vm6, %v1391_v36, %v1384_v26  ;;  %vm4197_vm15 = vmmov %vm4192_vm12  ;;  %v1453_v30 = vsel %vm4198_vm1, %v3366_v28, %v1452_v31  ;;  %1223 = vmatpush3.msra.mxu0 %v138_v45  ;;  %1353 = vmatpush3.msra.mxu1 %v138_v45  ;;  %v322_v51 = vld [vmem:[#allocation5 + $0xb0] sm:$0xff]  ;;  %v323_v49 = vld [vmem:[#allocation5 + $0xb8] sm:$0xff] }
  0xaa   :  { %vm1402_vm7 = vmor %vm1378_vm11, %vm4197_vm15  ;;  %v1397_v33 = vsel %vm1380_vm8, %v1396_v58, %v1392_v19  ;;  %v121_v37 = vsel %vm87_vm13, %v1453_v30, 0.0  ;;  %v354_v8 = vld [vmem:[#allocation5 + $0x1b0] sm:$0xff]  ;;  %v355_v36 = vld [vmem:[#allocation5 + $0x1b8] sm:$0xff] }
  0xab   :  { %v1401_v1 = vsel %vm1400_vm5, 2143289344, %v1397_v33  ;;  %v137_v47 = vmul.f32 %v121_v37, %v3346_v22  ;;  %vm4199_vm11 = vmmov %vm4198_vm1  ;;  %v335_v22 = vld [vmem:[#allocation5 + $0x118] sm:$0xff]  ;;  %v324_v59 = vld [vmem:[#allocation5 + $0xc0] sm:$0xff] }
  0xac   :  { %v1403_v9 = vsel %vm1402_vm7, 1065353216, %v1401_v1  ;;  %v356_v6 = vld [vmem:[#allocation5 + $0x1c0] sm:$0xff]  ;;  %v325_v54 = vld [vmem:[#allocation5 + $0xc8] sm:$0xff]  ;;  %v326_v45 = vld [vmem:[#allocation5 + $0xd0] sm:$0xff] }
  0xad   :  { %v1404_v20 = vsel %vm4199_vm11, %v3377_v46, %v1403_v9  ;;  %1224 = vmatprep.subr.mxu0 %v137_v47  ;;  %1338 = vmatprep.subr.mxu1 %v137_v47  ;;  %v304_v46 = vld [vmem:[#allocation5 + $0x20] sm:$0xff]  ;;  %v357_v58 = vld [vmem:[#allocation5 + $0x1c8] sm:$0xff]  ;;  %v358_v61 = vld [vmem:[#allocation5 + $0x1d0] sm:$0xff] }
  0xae   :  { %v120_v55 = vsel %vm86_vm4, %v1404_v20, 0.0  ;;  %1225 = vmatpush3.msra.mxu0 %v137_v47  ;;  %1354 = vmatpush3.msra.mxu1 %v137_v47  ;;  %v327_v26 = vld [vmem:[#allocation5 + $0xd8] sm:$0xff]  ;;  %v328_v19 = vld [vmem:[#allocation5 + $0xe0] sm:$0xff]  ;;  %v329_v33 = vld [vmem:[#allocation5 + $0xe8] sm:$0xff] }
  0xaf   :  { %v136_v28 = vmul.f32 %v120_v55, %v3354_v63  ;;  %v305_v63 = vld [vmem:[#allocation5 + $0x28] sm:$0xff]  ;;  %v359_v31 = vld [vmem:[#allocation5 + $0x1d8] sm:$0xff]  ;;  %v360_v30 = vld [vmem:[#allocation5 + $0x1e0] sm:$0xff] }
  0xb0   :  { %v361_v37 = vld [vmem:[#allocation5 + $0x1e8] sm:$0xff]  ;;  %v330_v1 = vld [vmem:[#allocation5 + $0xf0] sm:$0xff]  ;;  %v331_v9 = vld [vmem:[#allocation5 + $0xf8] sm:$0xff] }
  0xb1   :  { %1226 = vmatprep.subr.mxu0 %v136_v28  ;;  %1339 = vmatprep.subr.mxu1 %v136_v28  ;;  %v362_v47 = vld [vmem:[#allocation5 + $0x1f0] sm:$0xff]  ;;  %v363_v20 = vld [vmem:[#allocation5 + $0x1f8] sm:$0xff]  ;;  %v3768_v55 = vld [vmem:[%s3843_s3] ss:$0 sm:$0xff]  ;;  %s2283_s3 = smov [#allocation10]  }
  0xb2   :  { %1227 = vmatpush3.msra.mxu0 %v136_v28  ;;  %1355 = vmatpush3.msra.mxu1 %v136_v28  ;;  %s1101_s29 = sshll.u32 %s2283_s3, 4  ;;  %s1102_s29 = int_to_ptr.vmem [resolvable:$true] %s1101_s29 }
  0xb3   :  { %1229 = vmatmul.mubr.f32.vlgmr.msra.gmra.mxu0 %v301_v3  ;;  %1277 = vmatmul.mubr.f32.vlgmr.msra.gmra.mxu1 %v333_v11  ;;  %s2251_s30 = scalar_lea.vmem %s1102_s29, 8192  ;;  %p2256_p11 = scmp.lt.s32.totalorder %s1102_s29, %s1102_s29 }
  0xb4   :  { %1231 = vmatprep.mubr.f32.mxu0 %v302_v13  ;;  %1279 = vmatprep.mubr.f32.mxu1 %v334_v12  ;;  %p2252_p10 = scmp.ne.s32.totalorder %s1102_s29, %s2251_s30  ;;  %p2257_p12 = scmp.lt.s32.totalorder %s2251_s30, %s2251_s30 }
  0xb6   :  { %p2258_p13 = por %p2257_p12, %p2256_p11 }
  0xb7   :  { %1232 = vmatmul.mubr.f32.gmra.mxu0 %v303_v0  ;;  %1280 = vmatmul.mubr.f32.gmra.mxu1 %v335_v22 }
  0xb8   :  { %1234 = vmatprep.mubr.f32.mxu0 %v304_v46  ;;  %1282 = vmatprep.mubr.f32.mxu1 %v336_v52  ;;  %p2259_p0 = pnand %p2258_p13, %p2252_p10 }
  0xbb   :  { %1235 = vmatmul.mubr.f32.gmra.mxu0 %v305_v63  ;;  %1283 = vmatmul.mubr.f32.gmra.mxu1 %v337_v35 }
  0xbc   :  { %1237 = vmatprep.mubr.f32.mxu0 %v306_v23  ;;  %1285 = vmatprep.mubr.f32.mxu1 %v338_v39 }
  0xbf   :  { %1238 = vmatmul.mubr.f32.gmra.mxu0 %v307_v15  ;;  %1286 = vmatmul.mubr.f32.gmra.mxu1 %v339_v48 }
  0xc0   :  { %1240 = vmatprep.mubr.f32.mxu0 %v308_v27  ;;  %1288 = vmatprep.mubr.f32.mxu1 %v340_v5 }
  0xc3   :  { %1241 = vmatmul.mubr.f32.gmra.mxu0 %v309_v40  ;;  %1289 = vmatmul.mubr.f32.gmra.mxu1 %v341_v2 }
  0xc4   :  { %1243 = vmatprep.mubr.f32.mxu0 %v310_v4  ;;  %1291 = vmatprep.mubr.f32.mxu1 %v342_v56 }
  0xc7   :  { %1244 = vmatmul.mubr.f32.gmra.mxu0 %v311_v32  ;;  %1292 = vmatmul.mubr.f32.gmra.mxu1 %v343_v25 }
  0xc8   :  { %1246 = vmatprep.mubr.f32.mxu0 %v312_v18  ;;  %1294 = vmatprep.mubr.f32.mxu1 %v344_v42 }
  0xcb   :  { %1247 = vmatmul.mubr.f32.gmra.mxu0 %v313_v21  ;;  %1295 = vmatmul.mubr.f32.gmra.mxu1 %v345_v38 }
  0xcc   :  { %1249 = vmatprep.mubr.f32.mxu0 %v314_v7  ;;  %1297 = vmatprep.mubr.f32.mxu1 %v346_v34 }
  0xcf   :  { %1250 = vmatmul.mubr.f32.gmra.mxu0 %v315_v57  ;;  %1298 = vmatmul.mubr.f32.gmra.mxu1 %v347_v41 }
  0xd0   :  { %1252 = vmatprep.mubr.f32.mxu0 %v316_v17  ;;  %1300 = vmatprep.mubr.f32.mxu1 %v348_v50 }
  0xd3   :  { %1253 = vmatmul.mubr.f32.gmra.mxu0 %v317_v62  ;;  %1301 = vmatmul.mubr.f32.gmra.mxu1 %v349_v53 }
  0xd4   :  { %1255 = vmatprep.mubr.f32.mxu0 %v318_v10  ;;  %1303 = vmatprep.mubr.f32.mxu1 %v350_v60 }
  0xd7   :  { %1256 = vmatmul.mubr.f32.gmra.mxu0 %v319_v43  ;;  %1304 = vmatmul.mubr.f32.gmra.mxu1 %v351_v44 }
  0xd8   :  { %1258 = vmatprep.mubr.f32.mxu0 %v320_v16  ;;  %1306 = vmatprep.mubr.f32.mxu1 %v352_v29 }
  0xdb   :  { %1259 = vmatmul.mubr.f32.gmra.mxu0 %v321_v24  ;;  %1307 = vmatmul.mubr.f32.gmra.mxu1 %v353_v14 }
  0xdc   :  { %1261 = vmatprep.mubr.f32.mxu0 %v322_v51  ;;  %1309 = vmatprep.mubr.f32.mxu1 %v354_v8 }
  0xdf   :  { %1262 = vmatmul.mubr.f32.gmra.mxu0 %v323_v49  ;;  %1310 = vmatmul.mubr.f32.gmra.mxu1 %v355_v36 }
  0xe0   :  { %1264 = vmatprep.mubr.f32.mxu0 %v324_v59  ;;  %1312 = vmatprep.mubr.f32.mxu1 %v356_v6 }
  0xe3   :  { %1265 = vmatmul.mubr.f32.gmra.mxu0 %v325_v54  ;;  %1313 = vmatmul.mubr.f32.gmra.mxu1 %v357_v58 }
  0xe4   :  { %1267 = vmatprep.mubr.f32.mxu0 %v326_v45  ;;  %1315 = vmatprep.mubr.f32.mxu1 %v358_v61 }
  0xe7   :  { %1268 = vmatmul.mubr.f32.gmra.mxu0 %v327_v26  ;;  %1316 = vmatmul.mubr.f32.gmra.mxu1 %v359_v31 }
  0xe8   :  { %1270 = vmatprep.mubr.f32.mxu0 %v328_v19  ;;  %1318 = vmatprep.mubr.f32.mxu1 %v360_v30 }
  0xeb   :  { %1271 = vmatmul.mubr.f32.gmra.mxu0 %v329_v33  ;;  %1319 = vmatmul.mubr.f32.gmra.mxu1 %v361_v37 }
  0xec   :  { %1273 = vmatprep.mubr.f32.mxu0 %v330_v1  ;;  %1321 = vmatprep.mubr.f32.mxu1 %v362_v47 }
  0xef   :  { %1274 = vmatmul.mubr.f32.gmra.mxu0 %v331_v9  ;;  %1322 = vmatmul.mubr.f32.gmra.mxu1 %v363_v20 }
 0x173   :  { %v1230_v28 = vpop.f32.mrf.mxu0  ;;  %v1278_v3 = vpop.f32.mrf.mxu1 }
 0x174   :  { %v969_v11 = vadd.f32 %v1230_v28, %v3768_v55  ;;  %v1001_v13 = vadd.f32 %v1278_v3, %v3768_v55 }
 0x175   :  { %v447_v12 = vpop.f32.mrf.mxu0  ;;  %v607_v0 = vpop.f32.mrf.mxu1 }
 0x176   :  { %1033 = vst [vmem:[#allocation10 + $0x8] sm:$0xff] %v969_v11  ;;  %1065 = vst [vmem:[#allocation10 + $0x108] sm:$0xff] %v1001_v13  ;;  %v968_v22 = vadd.f32 %v3768_v55, %v447_v12  ;;  %v1000_v46 = vadd.f32 %v3768_v55, %v607_v0 }
 0x177   :  { %v1233_v52 = vpop.f32.mrf.mxu0  ;;  %v1281_v63 = vpop.f32.mrf.mxu1 }
 0x178   :  { %1032 = vst [vmem:[#allocation10] sm:$0xff] %v968_v22  ;;  %1064 = vst [vmem:[#allocation10 + $0x100] sm:$0xff] %v1000_v46  ;;  %v971_v35 = vadd.f32 %v1233_v52, %v3768_v55  ;;  %v1003_v23 = vadd.f32 %v1281_v63, %v3768_v55 }
 0x179   :  { %v457_v39 = vpop.f32.mrf.mxu0  ;;  %v617_v15 = vpop.f32.mrf.mxu1 }
 0x17a   :  { %1035 = vst [vmem:[#allocation10 + $0x18] sm:$0xff] %v971_v35  ;;  %1067 = vst [vmem:[#allocation10 + $0x118] sm:$0xff] %v1003_v23  ;;  %v970_v48 = vadd.f32 %v3768_v55, %v457_v39  ;;  %v1002_v27 = vadd.f32 %v3768_v55, %v617_v15 }
 0x17b   :  { %v1236_v5 = vpop.f32.mrf.mxu0  ;;  %v1284_v40 = vpop.f32.mrf.mxu1 }
 0x17c   :  { %1034 = vst [vmem:[#allocation10 + $0x10] sm:$0xff] %v970_v48  ;;  %1066 = vst [vmem:[#allocation10 + $0x110] sm:$0xff] %v1002_v27  ;;  %v973_v2 = vadd.f32 %v1236_v5, %v3768_v55  ;;  %v1005_v4 = vadd.f32 %v1284_v40, %v3768_v55 }
 0x17d   :  { %v467_v56 = vpop.f32.mrf.mxu0  ;;  %v627_v32 = vpop.f32.mrf.mxu1 }
 0x17e   :  { %1037 = vst [vmem:[#allocation10 + $0x28] sm:$0xff] %v973_v2  ;;  %1069 = vst [vmem:[#allocation10 + $0x128] sm:$0xff] %v1005_v4  ;;  %v972_v25 = vadd.f32 %v3768_v55, %v467_v56  ;;  %v1004_v18 = vadd.f32 %v3768_v55, %v627_v32 }
 0x17f   :  { %v1239_v42 = vpop.f32.mrf.mxu0  ;;  %v1287_v21 = vpop.f32.mrf.mxu1 }
 0x180   :  { %1036 = vst [vmem:[#allocation10 + $0x20] sm:$0xff] %v972_v25  ;;  %1068 = vst [vmem:[#allocation10 + $0x120] sm:$0xff] %v1004_v18  ;;  %v975_v38 = vadd.f32 %v1239_v42, %v3768_v55  ;;  %v1007_v7 = vadd.f32 %v1287_v21, %v3768_v55 }
 0x181   :  { %v477_v34 = vpop.f32.mrf.mxu0  ;;  %v637_v57 = vpop.f32.mrf.mxu1 }
 0x182   :  { %1039 = vst [vmem:[#allocation10 + $0x38] sm:$0xff] %v975_v38  ;;  %1071 = vst [vmem:[#allocation10 + $0x138] sm:$0xff] %v1007_v7  ;;  %v974_v41 = vadd.f32 %v3768_v55, %v477_v34  ;;  %v1006_v17 = vadd.f32 %v3768_v55, %v637_v57 }
 0x183   :  { %v1242_v50 = vpop.f32.mrf.mxu0  ;;  %v1290_v62 = vpop.f32.mrf.mxu1 }
 0x184   :  { %1038 = vst [vmem:[#allocation10 + $0x30] sm:$0xff] %v974_v41  ;;  %1070 = vst [vmem:[#allocation10 + $0x130] sm:$0xff] %v1006_v17  ;;  %v977_v53 = vadd.f32 %v1242_v50, %v3768_v55  ;;  %v1009_v10 = vadd.f32 %v1290_v62, %v3768_v55 }
 0x185   :  { %v487_v60 = vpop.f32.mrf.mxu0  ;;  %v647_v43 = vpop.f32.mrf.mxu1 }
 0x186   :  { %1041 = vst [vmem:[#allocation10 + $0x48] sm:$0xff] %v977_v53  ;;  %1073 = vst [vmem:[#allocation10 + $0x148] sm:$0xff] %v1009_v10  ;;  %v976_v44 = vadd.f32 %v3768_v55, %v487_v60  ;;  %v1008_v16 = vadd.f32 %v3768_v55, %v647_v43 }
 0x187   :  { %v1245_v29 = vpop.f32.mrf.mxu0  ;;  %v1293_v24 = vpop.f32.mrf.mxu1 }
 0x188   :  { %1040 = vst [vmem:[#allocation10 + $0x40] sm:$0xff] %v976_v44  ;;  %1072 = vst [vmem:[#allocation10 + $0x140] sm:$0xff] %v1008_v16  ;;  %v979_v14 = vadd.f32 %v1245_v29, %v3768_v55  ;;  %v1011_v51 = vadd.f32 %v1293_v24, %v3768_v55 }
 0x189   :  { %v497_v8 = vpop.f32.mrf.mxu0  ;;  %v657_v49 = vpop.f32.mrf.mxu1 }
 0x18a   :  { %1043 = vst [vmem:[#allocation10 + $0x58] sm:$0xff] %v979_v14  ;;  %1075 = vst [vmem:[#allocation10 + $0x158] sm:$0xff] %v1011_v51  ;;  %v978_v36 = vadd.f32 %v3768_v55, %v497_v8  ;;  %v1010_v59 = vadd.f32 %v3768_v55, %v657_v49 }
 0x18b   :  { %v1248_v6 = vpop.f32.mrf.mxu0  ;;  %v1296_v54 = vpop.f32.mrf.mxu1 }
 0x18c   :  { %1042 = vst [vmem:[#allocation10 + $0x50] sm:$0xff] %v978_v36  ;;  %1074 = vst [vmem:[#allocation10 + $0x150] sm:$0xff] %v1010_v59  ;;  %v981_v58 = vadd.f32 %v1248_v6, %v3768_v55  ;;  %v1013_v45 = vadd.f32 %v1296_v54, %v3768_v55 }
 0x18d   :  { %v507_v61 = vpop.f32.mrf.mxu0  ;;  %v667_v26 = vpop.f32.mrf.mxu1 }
 0x18e   :  { %1045 = vst [vmem:[#allocation10 + $0x68] sm:$0xff] %v981_v58  ;;  %1077 = vst [vmem:[#allocation10 + $0x168] sm:$0xff] %v1013_v45  ;;  %v980_v31 = vadd.f32 %v3768_v55, %v507_v61  ;;  %v1012_v19 = vadd.f32 %v3768_v55, %v667_v26 }
 0x18f   :  { %v1251_v30 = vpop.f32.mrf.mxu0  ;;  %v1299_v33 = vpop.f32.mrf.mxu1 }
 0x190   :  { %1044 = vst [vmem:[#allocation10 + $0x60] sm:$0xff] %v980_v31  ;;  %1076 = vst [vmem:[#allocation10 + $0x160] sm:$0xff] %v1012_v19  ;;  %v983_v37 = vadd.f32 %v1251_v30, %v3768_v55  ;;  %v1015_v1 = vadd.f32 %v1299_v33, %v3768_v55 }
 0x191   :  { %v517_v47 = vpop.f32.mrf.mxu0  ;;  %v677_v9 = vpop.f32.mrf.mxu1 }
 0x192   :  { %1047 = vst [vmem:[#allocation10 + $0x78] sm:$0xff] %v983_v37  ;;  %1079 = vst [vmem:[#allocation10 + $0x178] sm:$0xff] %v1015_v1  ;;  %v982_v20 = vadd.f32 %v3768_v55, %v517_v47  ;;  %v1014_v28 = vadd.f32 %v3768_v55, %v677_v9 }
 0x193   :  { %v1254_v3 = vpop.f32.mrf.mxu0  ;;  %v1302_v11 = vpop.f32.mrf.mxu1 }
 0x194   :  { %1046 = vst [vmem:[#allocation10 + $0x70] sm:$0xff] %v982_v20  ;;  %1078 = vst [vmem:[#allocation10 + $0x170] sm:$0xff] %v1014_v28  ;;  %v985_v13 = vadd.f32 %v1254_v3, %v3768_v55  ;;  %v1017_v12 = vadd.f32 %v1302_v11, %v3768_v55 }
 0x195   :  { %v527_v0 = vpop.f32.mrf.mxu0  ;;  %v687_v22 = vpop.f32.mrf.mxu1 }
 0x196   :  { %1049 = vst [vmem:[#allocation10 + $0x88] sm:$0xff] %v985_v13  ;;  %1081 = vst [vmem:[#allocation10 + $0x188] sm:$0xff] %v1017_v12  ;;  %v984_v46 = vadd.f32 %v3768_v55, %v527_v0  ;;  %v1016_v52 = vadd.f32 %v3768_v55, %v687_v22 }
 0x197   :  { %v1257_v63 = vpop.f32.mrf.mxu0  ;;  %v1305_v35 = vpop.f32.mrf.mxu1 }
 0x198   :  { %1048 = vst [vmem:[#allocation10 + $0x80] sm:$0xff] %v984_v46  ;;  %1080 = vst [vmem:[#allocation10 + $0x180] sm:$0xff] %v1016_v52  ;;  %v987_v23 = vadd.f32 %v1257_v63, %v3768_v55  ;;  %v1019_v39 = vadd.f32 %v1305_v35, %v3768_v55 }
 0x199   :  { %v537_v15 = vpop.f32.mrf.mxu0  ;;  %v697_v48 = vpop.f32.mrf.mxu1 }
 0x19a   :  { %1051 = vst [vmem:[#allocation10 + $0x98] sm:$0xff] %v987_v23  ;;  %1083 = vst [vmem:[#allocation10 + $0x198] sm:$0xff] %v1019_v39  ;;  %v986_v27 = vadd.f32 %v3768_v55, %v537_v15  ;;  %v1018_v5 = vadd.f32 %v3768_v55, %v697_v48 }
 0x19b   :  { %v1260_v40 = vpop.f32.mrf.mxu0  ;;  %v1308_v2 = vpop.f32.mrf.mxu1 }
 0x19c   :  { %1050 = vst [vmem:[#allocation10 + $0x90] sm:$0xff] %v986_v27  ;;  %1082 = vst [vmem:[#allocation10 + $0x190] sm:$0xff] %v1018_v5  ;;  %v989_v4 = vadd.f32 %v1260_v40, %v3768_v55  ;;  %v1021_v56 = vadd.f32 %v1308_v2, %v3768_v55 }
 0x19d   :  { %v547_v32 = vpop.f32.mrf.mxu0  ;;  %v707_v25 = vpop.f32.mrf.mxu1 }
 0x19e   :  { %1053 = vst [vmem:[#allocation10 + $0xa8] sm:$0xff] %v989_v4  ;;  %1085 = vst [vmem:[#allocation10 + $0x1a8] sm:$0xff] %v1021_v56  ;;  %v988_v18 = vadd.f32 %v3768_v55, %v547_v32  ;;  %v1020_v42 = vadd.f32 %v3768_v55, %v707_v25 }
 0x19f   :  { %v1263_v21 = vpop.f32.mrf.mxu0  ;;  %v1311_v38 = vpop.f32.mrf.mxu1 }
 0x1a0   :  { %1052 = vst [vmem:[#allocation10 + $0xa0] sm:$0xff] %v988_v18  ;;  %1084 = vst [vmem:[#allocation10 + $0x1a0] sm:$0xff] %v1020_v42  ;;  %v991_v7 = vadd.f32 %v1263_v21, %v3768_v55  ;;  %v1023_v34 = vadd.f32 %v1311_v38, %v3768_v55 }
 0x1a1   :  { %v557_v57 = vpop.f32.mrf.mxu0  ;;  %v717_v41 = vpop.f32.mrf.mxu1 }
 0x1a2   :  { %1055 = vst [vmem:[#allocation10 + $0xb8] sm:$0xff] %v991_v7  ;;  %1087 = vst [vmem:[#allocation10 + $0x1b8] sm:$0xff] %v1023_v34  ;;  %v990_v17 = vadd.f32 %v3768_v55, %v557_v57  ;;  %v1022_v50 = vadd.f32 %v3768_v55, %v717_v41 }
 0x1a3   :  { %v1266_v62 = vpop.f32.mrf.mxu0  ;;  %v1314_v53 = vpop.f32.mrf.mxu1 }
 0x1a4   :  { %1054 = vst [vmem:[#allocation10 + $0xb0] sm:$0xff] %v990_v17  ;;  %1086 = vst [vmem:[#allocation10 + $0x1b0] sm:$0xff] %v1022_v50  ;;  %v993_v10 = vadd.f32 %v1266_v62, %v3768_v55  ;;  %v1025_v60 = vadd.f32 %v1314_v53, %v3768_v55 }
 0x1a5   :  { %v567_v43 = vpop.f32.mrf.mxu0  ;;  %v727_v44 = vpop.f32.mrf.mxu1 }
 0x1a6   :  { %1057 = vst [vmem:[#allocation10 + $0xc8] sm:$0xff] %v993_v10  ;;  %1089 = vst [vmem:[#allocation10 + $0x1c8] sm:$0xff] %v1025_v60  ;;  %v992_v16 = vadd.f32 %v3768_v55, %v567_v43  ;;  %v1024_v29 = vadd.f32 %v3768_v55, %v727_v44 }
 0x1a7   :  { %v1269_v24 = vpop.f32.mrf.mxu0  ;;  %v1317_v14 = vpop.f32.mrf.mxu1 }
 0x1a8   :  { %1056 = vst [vmem:[#allocation10 + $0xc0] sm:$0xff] %v992_v16  ;;  %1088 = vst [vmem:[#allocation10 + $0x1c0] sm:$0xff] %v1024_v29  ;;  %v995_v51 = vadd.f32 %v1269_v24, %v3768_v55  ;;  %v1027_v8 = vadd.f32 %v1317_v14, %v3768_v55 }
 0x1a9   :  { %v577_v49 = vpop.f32.mrf.mxu0  ;;  %v737_v36 = vpop.f32.mrf.mxu1 }
 0x1aa   :  { %1059 = vst [vmem:[#allocation10 + $0xd8] sm:$0xff] %v995_v51  ;;  %1091 = vst [vmem:[#allocation10 + $0x1d8] sm:$0xff] %v1027_v8  ;;  %v994_v59 = vadd.f32 %v3768_v55, %v577_v49  ;;  %v1026_v6 = vadd.f32 %v3768_v55, %v737_v36 }
 0x1ab   :  { %v1272_v54 = vpop.f32.mrf.mxu0  ;;  %v1320_v58 = vpop.f32.mrf.mxu1 }
 0x1ac   :  { %1058 = vst [vmem:[#allocation10 + $0xd0] sm:$0xff] %v994_v59  ;;  %1090 = vst [vmem:[#allocation10 + $0x1d0] sm:$0xff] %v1026_v6  ;;  %v997_v45 = vadd.f32 %v1272_v54, %v3768_v55  ;;  %v1029_v61 = vadd.f32 %v1320_v58, %v3768_v55 }
 0x1ad   :  { %v587_v26 = vpop.f32.mrf.mxu0  ;;  %v747_v31 = vpop.f32.mrf.mxu1 }
 0x1ae   :  { %1061 = vst [vmem:[#allocation10 + $0xe8] sm:$0xff] %v997_v45  ;;  %1093 = vst [vmem:[#allocation10 + $0x1e8] sm:$0xff] %v1029_v61  ;;  %v996_v19 = vadd.f32 %v3768_v55, %v587_v26  ;;  %v1028_v30 = vadd.f32 %v3768_v55, %v747_v31 }
 0x1af   :  { %v1275_v33 = vpop.f32.mrf.mxu0  ;;  %v1323_v37 = vpop.f32.mrf.mxu1 }
 0x1b0   :  { %1060 = vst [vmem:[#allocation10 + $0xe0] sm:$0xff] %v996_v19  ;;  %1092 = vst [vmem:[#allocation10 + $0x1e0] sm:$0xff] %v1028_v30  ;;  %v999_v1 = vadd.f32 %v1275_v33, %v3768_v55  ;;  %v1031_v47 = vadd.f32 %v1323_v37, %v3768_v55 }
 0x1b1   :  { %v597_v9 = vpop.f32.mrf.mxu0  ;;  %v757_v20 = vpop.f32.mrf.mxu1 }
 0x1b2   :  { %1063 = vst [vmem:[#allocation10 + $0xf8] sm:$0xff] %v999_v1  ;;  %1095 = vst [vmem:[#allocation10 + $0x1f8] sm:$0xff] %v1031_v47  ;;  %v998_v28 = vadd.f32 %v3768_v55, %v597_v9  ;;  %v1030_v3 = vadd.f32 %v3768_v55, %v757_v20 }
 0x1b4   :  { %1062 = vst [vmem:[#allocation10 + $0xf0] sm:$0xff] %v998_v28  ;;  %1094 = vst [vmem:[#allocation10 + $0x1f0] sm:$0xff] %v1030_v3 }
 0x1b5   :  { %2262 = shalt.err (!%p2259_p0)
}
 0x1b6   :  { %1107 = dma.vmem_to_hbm [thread:$0]  %s1102_s29, 8192, %s3844_s4, [#allocation7], %s2278_s18, %s2278_s18, %s2279_s19  }
 0x1b7   :  { %2275 = dma.done.wait [#allocation7], 8192  }
 0x1b8   :  { %2276 = vsyncadd [#allocation7], 4294959104 }
 0x1b9   :  { %1111 = vsyncpa [#allocation6], 1 }
 0x1ba   :  { %1112 = vsyncpa [#allocation9], 1 }
 0x1bb   :  { %1113 = vsyncpa [#allocation7], 1 }

</bundles_post_ra>
